<compile_context>
chip_gen: v6e
topology: v6e:2x2x1
jax: 0.10.0
libtpu: 0.0.40
codegen_flags: <defaults>
</compile_context>

<pallas_src>
import jax
import jax.numpy as jnp
from jax.experimental import pallas as pl
from jax.experimental.pallas import tpu as pltpu


def _round_up(x, m):
    return (x + m - 1) // m * m


# --------------------------------------------------------------------------
# Pallas kernels
# --------------------------------------------------------------------------
def _conv_relu_pool_kernel(p_ref, w_ref, b_ref, o_ref):
    """Fused conv-as-matmul + 2x2/2 max-pool + bias + ReLU (one MXU matmul).

    p_ref: (4, TILE_M, Kpad) bf16  im2col patches for the 4 positions of each
                                   2x2 pool window (same row order), K padded
                                   with zeros to a lane-dense multiple of 128.
    w_ref: (Kpad, Cout)      bf16  conv weights as a matmul matrix (zero rows
                                   in the K padding).
    b_ref: (1, Cout)         f32
    o_ref: (TILE_M, Cout)    bf16  pooled+activated output rows.
    """
    a, t, k = p_ref.shape                       # static block shape
    p = p_ref[...].reshape(a * t, k)            # layout no-op: t % 16 == 0
    y = jnp.dot(p, w_ref[...], preferred_element_type=jnp.float32)
    # Max over the 4 pooling parities: aligned row slabs, pure VPU maxima.
    y = jnp.maximum(jnp.maximum(y[0 * t:1 * t], y[1 * t:2 * t]),
                    jnp.maximum(y[2 * t:3 * t], y[3 * t:4 * t]))
    # Bias is identical across the 4 window positions -> add once after the
    # max; ReLU commutes with max, so a single ReLU at the end is exact.
    y = jnp.maximum(y + b_ref[...], 0.0)
    o_ref[...] = y.astype(o_ref.dtype)


def _fc_tail_kernel(x_ref, w1_ref, b1_ref, w2_ref, b2_ref, w3_ref, b3_ref,
                    o_ref):
    """Fused fc1+ReLU -> fc2+ReLU -> fc3 -> log_softmax (per batch tile).

    Hidden widths are padded to 128 (zero weight cols/rows + zero bias), so
    intermediates are lane-dense; padding is numerically exact.
    """
    h = jnp.dot(x_ref[...], w1_ref[...], preferred_element_type=jnp.float32)
    h = jnp.maximum(h + b1_ref[...], 0.0).astype(jnp.bfloat16)
    h = jnp.dot(h, w2_ref[...], preferred_element_type=jnp.float32)
    h = jnp.maximum(h + b2_ref[...], 0.0).astype(jnp.bfloat16)
    logits = jnp.dot(h, w3_ref[...],
                     preferred_element_type=jnp.float32) + b3_ref[...]
    m = jnp.max(logits, axis=-1, keepdims=True)
    z = logits - m
    lse = jnp.log(jnp.sum(jnp.exp(z), axis=-1, keepdims=True))
    o_ref[...] = (z - lse).astype(o_ref.dtype)


# --------------------------------------------------------------------------
# Wrappers
# --------------------------------------------------------------------------
_VMEM_LIMIT = 48 * 1024 * 1024          # < v7x 64 MiB physical, > 32 MiB default
_TARGET_TILE_M = 2048                   # conv matmul rows per grid step
_TARGET_TILE_B = 512                    # fc-tail batch rows per grid step


def _pooled_parity_patches(x, kh, kw, k_pad, tile_m):
    """im2col for a valid stride-1 (kh,kw) conv, restricted to the 4 pooling
    parities of the following 2x2/stride-2 max pool.  Plain-JAX glue
    (static strided slices + concat).  Returns bf16 (4, Mpad, k_pad) with the
    K axis zero-padded to k_pad and the M axis zero-padded to a multiple of
    tile_m.  Feature order inside K is (di, dj, ci), matching the weights."""
    B, H, W, C = x.shape
    OH, OW = H - kh + 1, W - kw + 1
    POH, POW = OH // 2, OW // 2
    M = B * POH * POW
    K = kh * kw * C
    parts = []
    for a in range(2):          # conv-output row parity inside pool window
        for b in range(2):      # conv-output col parity inside pool window
            cols = []
            for di in range(kh):
                for dj in range(kw):
                    cols.append(
                        x[:, a + di: a + di + 2 * POH: 2,
                             b + dj: b + dj + 2 * POW: 2, :])
            patch = jnp.concatenate(cols, axis=-1)            # (B,POH,POW,K)
            parts.append(patch.reshape(M, K))
    patches = jnp.stack(parts, axis=0).astype(jnp.bfloat16)   # (4, M, K)
    m_extra = _round_up(M, tile_m) - M
    patches = jnp.pad(patches, ((0, 0), (0, m_extra), (0, k_pad - K)))
    return patches, (B, POH, POW, M)


def conv_relu_pool(x, w_mat, b_row):
    """x: (B,H,W,Cin) bf16 NHWC -> (B,POH,POW,Cout) bf16, one pallas_call."""
    kh = kw = 5
    k_pad, Cout = w_mat.shape
    B, H, W, _ = x.shape
    POH, POW = (H - kh + 1) // 2, (W - kw + 1) // 2
    M = B * POH * POW
    # TILE_M: big (amortize per-step overhead), multiple of 16 (bf16 sublane
    # pack -> in-kernel collapse is a layout no-op); M is padded to a multiple
    # of TILE_M so no block is ragged.
    tile_m = min(_TARGET_TILE_M, _round_up(M, 16))
    patches, _ = _pooled_parity_patches(x, kh, kw, k_pad, tile_m)
    m_pad = patches.shape[1]
    grid = (m_pad // tile_m,)
    out = pl.pallas_call(
        _conv_relu_pool_kernel,
        out_shape=jax.ShapeDtypeStruct((m_pad, Cout), jnp.bfloat16),
        grid=grid,
        in_specs=[
            pl.BlockSpec((4, tile_m, k_pad), lambda i: (0, i, 0)),
            pl.BlockSpec((k_pad, Cout), lambda i: (0, 0)),
            pl.BlockSpec((1, Cout), lambda i: (0, 0)),
        ],
        out_specs=pl.BlockSpec((tile_m, Cout), lambda i: (i, 0)),
        compiler_params=pltpu.CompilerParams(
            dimension_semantics=("parallel",),
            vmem_limit_bytes=_VMEM_LIMIT),
    )(patches, w_mat, b_row)
    return out[:M].reshape(B, POH, POW, Cout)


def fc_tail(x_flat, params):
    """x_flat: (B, 400) bf16 -> (B, dim_out) f32 log-probs, one pallas_call
    gridded over batch tiles (weights re-used / VMEM-resident each step)."""
    B, K = x_flat.shape
    dim_out = params["fc3_w"].shape[1]
    tile_b = min(_TARGET_TILE_B, B)
    grid = (pl.cdiv(B, tile_b),)
    return pl.pallas_call(
        _fc_tail_kernel,
        out_shape=jax.ShapeDtypeStruct((B, dim_out), jnp.float32),
        grid=grid,
        in_specs=[
            pl.BlockSpec((tile_b, K), lambda i: (i, 0)),
            pl.BlockSpec(params["fc1_w"].shape, lambda i: (0, 0)),
            pl.BlockSpec(params["fc1_b"].shape, lambda i: (0, 0)),
            pl.BlockSpec(params["fc2_w"].shape, lambda i: (0, 0)),
            pl.BlockSpec(params["fc2_b"].shape, lambda i: (0, 0)),
            pl.BlockSpec(params["fc3_w"].shape, lambda i: (0, 0)),
            pl.BlockSpec(params["fc3_b"].shape, lambda i: (0, 0)),
        ],
        out_specs=pl.BlockSpec((tile_b, dim_out), lambda i: (i, 0)),
        compiler_params=pltpu.CompilerParams(
            dimension_semantics=("parallel",),
            vmem_limit_bytes=_VMEM_LIMIT),
    )(x_flat,
      params["fc1_w"], params["fc1_b"],
      params["fc2_w"], params["fc2_b"],
      params["fc3_w"], params["fc3_b"])


# --------------------------------------------------------------------------
# Model: deterministic params (kernel-ready layout) + forward
# --------------------------------------------------------------------------
def init_params(key, dim_out):
    """PyTorch-default-style U(-1/sqrt(fan_in), +1/sqrt(fan_in)) init, stored
    directly in kernel-ready layout:
      * conv weights as (Kpad, Cout) bf16 matmul matrices, K zero-padded to
        128 / 256 for lane-dense MXU feed,
      * fc weights transposed, fc1 input rows permuted to (h, w, c) flatten
        order (removes the per-forward activation transpose), hidden widths
        zero-padded 120/84 -> 128, all bf16,
      * biases as (1, N) f32 (zero-padded to match).
    All relayout/pad/cast happens once here, never per forward."""
    def u(k, shape, fan_in):
        bound = 1.0 / float(fan_in) ** 0.5
        return jax.random.uniform(k, shape, jnp.float32, -bound, bound)

    def conv_mat(w, k_pad):   # torch (Cout,Cin,KH,KW) -> (Kpad, Cout) bf16
        Cout, Cin, KH, KW = w.shape
        m = jnp.transpose(w, (2, 3, 1, 0)).reshape(KH * KW * Cin, Cout)
        m = jnp.pad(m, ((0, k_pad - KH * KW * Cin), (0, 0)))
        return m.astype(jnp.bfloat16)

    ks = jax.random.split(key, 10)

    # fc1: torch weight is (120, 400) with input index c*25 + h*5 + w.
    # Permute the 400 input rows to (h, w, c) order so the NHWC conv2 output
    # can be flattened directly (no per-forward transpose); then pad 120->128.
    fc1_t = u(ks[4], (120, 400), 400)
    perm = jnp.transpose(jnp.arange(400).reshape(16, 5, 5), (1, 2, 0)).reshape(400)
    fc1_w = jnp.pad(fc1_t.T[perm, :], ((0, 0), (0, 8)))          # (400, 128)
    fc1_b = jnp.pad(u(ks[5], (1, 120), 400), ((0, 0), (0, 8)))   # (1, 128)

    fc2_t = u(ks[6], (84, 120), 120)
    fc2_w = jnp.pad(fc2_t.T, ((0, 8), (0, 44)))                  # (128, 128)
    fc2_b = jnp.pad(u(ks[7], (1, 84), 120), ((0, 0), (0, 44)))   # (1, 128)

    fc3_t = u(ks[8], (dim_out, 84), 84)
    fc3_w = jnp.pad(fc3_t.T, ((0, 44), (0, 0)))                  # (128, dim_out)
    fc3_b = u(ks[9], (1, dim_out), 84)                           # (1, dim_out)

    return {
        "conv1_w": conv_mat(u(ks[0], (6, 3, 5, 5), 75), 128),    # (128, 6)
        "conv1_b": u(ks[1], (1, 6), 75),
        "conv2_w": conv_mat(u(ks[2], (16, 6, 5, 5), 150), 256),  # (256, 16)
        "conv2_b": u(ks[3], (1, 16), 150),
        "fc1_w": fc1_w.astype(jnp.bfloat16),
        "fc1_b": fc1_b,
        "fc2_w": fc2_w.astype(jnp.bfloat16),
        "fc2_b": fc2_b,
        "fc3_w": fc3_w.astype(jnp.bfloat16),
        "fc3_b": fc3_b,
    }


def cnn_forward(params, x_nchw):
    x = jnp.transpose(x_nchw, (0, 2, 3, 1)).astype(jnp.bfloat16)     # -> NHWC
    x = conv_relu_pool(x, params["conv1_w"], params["conv1_b"])      # (B,14,14,6) bf16
    x = conv_relu_pool(x, params["conv2_w"], params["conv2_b"])      # (B,5,5,16) bf16
    B = x.shape[0]
    # Flatten in (h, w, c) order; fc1_w rows were permuted at init to match
    # torch's x.view(-1, 16*5*5) semantics (no activation transpose needed).
    x = x.reshape(B, 5 * 5 * 16)
    return fc_tail(x, params)


if __name__ == "__main__":
    dim_out = 10
    key = jax.random.PRNGKey(0)
    k_params, k_x = jax.random.split(key)

    params = init_params(k_params, dim_out)
    # Input must be (B, 3, 32, 32) for the 16*5*5 flatten to hold.
    x = jax.random.normal(k_x, (2, 3, 32, 32), jnp.float32)

    out = jax.block_until_ready(jax.jit(cnn_forward)(params, x))

    assert out.shape == (2, dim_out)
    assert bool(jnp.all(jnp.isfinite(out)))
    # rows of log_softmax must exp-sum to 1 (computed in f32 inside the kernel)
    assert bool(jnp.allclose(jnp.sum(jnp.exp(out), axis=1), 1.0, atol=1e-3))
    print("KERNEL_OK")
</pallas_src>

<mosaic_0001>
module attributes {stable_mosaic.version = 11 : i64} {
  func.func @_conv_relu_pool_kernel(%arg0: i32, %arg1: memref<4x400x128xbf16, #tpu.memory_space<vmem>>, %arg2: memref<128x6xbf16, #tpu.memory_space<vmem>>, %arg3: memref<1x6xf32, #tpu.memory_space<vmem>>, %arg4: memref<400x6xbf16, #tpu.memory_space<vmem>>) attributes {dimension_semantics = [#tpu.dimension_semantics<parallel>], iteration_bounds = array<i64: 1>, scalar_prefetch = 0 : i64, scratch_operands = 0 : i64, tpu.core_type = #tpu.core_type<tc>, window_params = [{transform_indices = @transform_0, window_bounds = array<i64: 4, 400, 128>}, {pipeline_mode = #tpu.pipeline_mode<synchronous>, transform_indices = @transform_1, window_bounds = array<i64: 128, 6>}, {pipeline_mode = #tpu.pipeline_mode<synchronous>, transform_indices = @transform_2, window_bounds = array<i64: 1, 6>}, {transform_indices = @transform_3, window_bounds = array<i64: 400, 6>}]} {
    %c0 = arith.constant 0 : index
    %c0_0 = arith.constant 0 : index
    %c0_1 = arith.constant 0 : index
    %0 = vector.load %arg1[%c0, %c0_0, %c0_1] : memref<4x400x128xbf16, #tpu.memory_space<vmem>>, vector<4x400x128xbf16>
    %1 = vector.shape_cast %0 : vector<4x400x128xbf16> to vector<1600x128xbf16>
    %c0_2 = arith.constant 0 : index
    %c0_3 = arith.constant 0 : index
    %2 = vector.load %arg2[%c0_2, %c0_3] : memref<128x6xbf16, #tpu.memory_space<vmem>>, vector<128x6xbf16>
    %cst = arith.constant dense<0.000000e+00> : vector<1600x6xf32>
    %3 = tpu.matmul %1, %2, %cst {dimension_numbers = #tpu.dot_dimension_numbers<[1], [0], [0], [1], [0, 0, 1, 1], [], []>} : vector<1600x128xbf16>, vector<128x6xbf16>, vector<1600x6xf32> -> vector<1600x6xf32>
    %4 = vector.extract_strided_slice %3 {offsets = [0, 0], sizes = [400, 6], strides = [1, 1]} : vector<1600x6xf32> to vector<400x6xf32>
    %5 = vector.extract_strided_slice %3 {offsets = [400, 0], sizes = [400, 6], strides = [1, 1]} : vector<1600x6xf32> to vector<400x6xf32>
    %6 = arith.maximumf %4, %5 : vector<400x6xf32>
    %7 = vector.extract_strided_slice %3 {offsets = [800, 0], sizes = [400, 6], strides = [1, 1]} : vector<1600x6xf32> to vector<400x6xf32>
    %8 = vector.extract_strided_slice %3 {offsets = [1200, 0], sizes = [400, 6], strides = [1, 1]} : vector<1600x6xf32> to vector<400x6xf32>
    %9 = arith.maximumf %7, %8 : vector<400x6xf32>
    %10 = arith.maximumf %6, %9 : vector<400x6xf32>
    %c0_4 = arith.constant 0 : index
    %c0_5 = arith.constant 0 : index
    %11 = vector.load %arg3[%c0_4, %c0_5] : memref<1x6xf32, #tpu.memory_space<vmem>>, vector<1x6xf32>
    %12 = vector.broadcast %11 : vector<1x6xf32> to vector<400x6xf32>
    %13 = arith.addf %10, %12 : vector<400x6xf32>
    %cst_6 = arith.constant 0.000000e+00 : f32
    %14 = vector.broadcast %cst_6 : f32 to vector<400x6xf32>
    %15 = arith.maximumf %13, %14 : vector<400x6xf32>
    %16 = arith.truncf %15 : vector<400x6xf32> to vector<400x6xbf16>
    %c0_7 = arith.constant 0 : index
    %c0_8 = arith.constant 0 : index
    %17 = vector.load %arg4[%c0_7, %c0_8] : memref<400x6xbf16, #tpu.memory_space<vmem>>, vector<400x6xbf16>
    tpu.vector_store %arg4[%c0_7, %c0_8], %16 {strides = array<i32>} : memref<400x6xbf16, #tpu.memory_space<vmem>>, vector<400x6xbf16>,
    return
  }
  func.func @transform_0(%arg0: i32) -> (i32, i32, i32) {
    %c0_i32 = arith.constant 0 : i32
    %c0_i32_0 = arith.constant 0 : i32
    %c0_i32_1 = arith.constant 0 : i32
    return %c0_i32, %arg0, %c0_i32_0 : i32, i32, i32
  }
  func.func @transform_1(%arg0: i32) -> (i32, i32) {
    %c0_i32 = arith.constant 0 : i32
    %c0_i32_0 = arith.constant 0 : i32
    %c0_i32_1 = arith.constant 0 : i32
    return %c0_i32, %c0_i32_0 : i32, i32
  }
  func.func @transform_2(%arg0: i32) -> (i32, i32) {
    %c0_i32 = arith.constant 0 : i32
    %c0_i32_0 = arith.constant 0 : i32
    %c0_i32_1 = arith.constant 0 : i32
    return %c0_i32, %c0_i32_0 : i32, i32
  }
  func.func @transform_3(%arg0: i32) -> (i32, i32) {
    %c0_i32 = arith.constant 0 : i32
    %c0_i32_0 = arith.constant 0 : i32
    return %arg0, %c0_i32 : i32, i32
  }
}

module attributes {stable_mosaic.version = 11 : i64} {
  func.func @_conv_relu_pool_kernel(%arg0: i32, %arg1: memref<4x64x256xbf16, #tpu.memory_space<vmem>>, %arg2: memref<256x16xbf16, #tpu.memory_space<vmem>>, %arg3: memref<1x16xf32, #tpu.memory_space<vmem>>, %arg4: memref<64x16xbf16, #tpu.memory_space<vmem>>) attributes {dimension_semantics = [#tpu.dimension_semantics<parallel>], iteration_bounds = array<i64: 1>, scalar_prefetch = 0 : i64, scratch_operands = 0 : i64, tpu.core_type = #tpu.core_type<tc>, window_params = [{transform_indices = @transform_0, window_bounds = array<i64: 4, 64, 256>}, {pipeline_mode = #tpu.pipeline_mode<synchronous>, transform_indices = @transform_1, window_bounds = array<i64: 256, 16>}, {pipeline_mode = #tpu.pipeline_mode<synchronous>, transform_indices = @transform_2, window_bounds = array<i64: 1, 16>}, {transform_indices = @transform_3, window_bounds = array<i64: 64, 16>}]} {
    %c0 = arith.constant 0 : index
    %c0_0 = arith.constant 0 : index
    %c0_1 = arith.constant 0 : index
    %0 = vector.load %arg1[%c0, %c0_0, %c0_1] : memref<4x64x256xbf16, #tpu.memory_space<vmem>>, vector<4x64x256xbf16>
    %1 = vector.shape_cast %0 : vector<4x64x256xbf16> to vector<256x256xbf16>
    %c0_2 = arith.constant 0 : index
    %c0_3 = arith.constant 0 : index
    %2 = vector.load %arg2[%c0_2, %c0_3] : memref<256x16xbf16, #tpu.memory_space<vmem>>, vector<256x16xbf16>
    %cst = arith.constant dense<0.000000e+00> : vector<256x16xf32>
    %3 = tpu.matmul %1, %2, %cst {dimension_numbers = #tpu.dot_dimension_numbers<[1], [0], [0], [1], [0, 0, 1, 1], [], []>} : vector<256x256xbf16>, vector<256x16xbf16>, vector<256x16xf32> -> vector<256x16xf32>
    %4 = vector.extract_strided_slice %3 {offsets = [0, 0], sizes = [64, 16], strides = [1, 1]} : vector<256x16xf32> to vector<64x16xf32>
    %5 = vector.extract_strided_slice %3 {offsets = [64, 0], sizes = [64, 16], strides = [1, 1]} : vector<256x16xf32> to vector<64x16xf32>
    %6 = arith.maximumf %4, %5 : vector<64x16xf32>
    %7 = vector.extract_strided_slice %3 {offsets = [128, 0], sizes = [64, 16], strides = [1, 1]} : vector<256x16xf32> to vector<64x16xf32>
    %8 = vector.extract_strided_slice %3 {offsets = [192, 0], sizes = [64, 16], strides = [1, 1]} : vector<256x16xf32> to vector<64x16xf32>
    %9 = arith.maximumf %7, %8 : vector<64x16xf32>
    %10 = arith.maximumf %6, %9 : vector<64x16xf32>
    %c0_4 = arith.constant 0 : index
    %c0_5 = arith.constant 0 : index
    %11 = vector.load %arg3[%c0_4, %c0_5] : memref<1x16xf32, #tpu.memory_space<vmem>>, vector<1x16xf32>
    %12 = vector.broadcast %11 : vector<1x16xf32> to vector<64x16xf32>
    %13 = arith.addf %10, %12 : vector<64x16xf32>
    %cst_6 = arith.constant 0.000000e+00 : f32
    %14 = vector.broadcast %cst_6 : f32 to vector<64x16xf32>
    %15 = arith.maximumf %13, %14 : vector<64x16xf32>
    %16 = arith.truncf %15 : vector<64x16xf32> to vector<64x16xbf16>
    %c0_7 = arith.constant 0 : index
    %c0_8 = arith.constant 0 : index
    %17 = vector.load %arg4[%c0_7, %c0_8] : memref<64x16xbf16, #tpu.memory_space<vmem>>, vector<64x16xbf16>
    tpu.vector_store %arg4[%c0_7, %c0_8], %16 {strides = array<i32>} : memref<64x16xbf16, #tpu.memory_space<vmem>>, vector<64x16xbf16>,
    return
  }
  func.func @transform_0(%arg0: i32) -> (i32, i32, i32) {
    %c0_i32 = arith.constant 0 : i32
    %c0_i32_0 = arith.constant 0 : i32
    %c0_i32_1 = arith.constant 0 : i32
    return %c0_i32, %arg0, %c0_i32_0 : i32, i32, i32
  }
  func.func @transform_1(%arg0: i32) -> (i32, i32) {
    %c0_i32 = arith.constant 0 : i32
    %c0_i32_0 = arith.constant 0 : i32
    %c0_i32_1 = arith.constant 0 : i32
    return %c0_i32, %c0_i32_0 : i32, i32
  }
  func.func @transform_2(%arg0: i32) -> (i32, i32) {
    %c0_i32 = arith.constant 0 : i32
    %c0_i32_0 = arith.constant 0 : i32
    %c0_i32_1 = arith.constant 0 : i32
    return %c0_i32, %c0_i32_0 : i32, i32
  }
  func.func @transform_3(%arg0: i32) -> (i32, i32) {
    %c0_i32 = arith.constant 0 : i32
    %c0_i32_0 = arith.constant 0 : i32
    return %arg0, %c0_i32 : i32, i32
  }
}

module attributes {stable_mosaic.version = 11 : i64} {
  func.func @_fc_tail_kernel(%arg0: i32, %arg1: memref<2x400xbf16, #tpu.memory_space<vmem>>, %arg2: memref<400x128xbf16, #tpu.memory_space<vmem>>, %arg3: memref<1x128xf32, #tpu.memory_space<vmem>>, %arg4: memref<128x128xbf16, #tpu.memory_space<vmem>>, %arg5: memref<1x128xf32, #tpu.memory_space<vmem>>, %arg6: memref<128x10xbf16, #tpu.memory_space<vmem>>, %arg7: memref<1x10xf32, #tpu.memory_space<vmem>>, %arg8: memref<2x10xf32, #tpu.memory_space<vmem>>) attributes {dimension_semantics = [#tpu.dimension_semantics<parallel>], iteration_bounds = array<i64: 1>, scalar_prefetch = 0 : i64, scratch_operands = 0 : i64, tpu.core_type = #tpu.core_type<tc>, window_params = [{transform_indices = @transform_0, window_bounds = array<i64: 2, 400>}, {pipeline_mode = #tpu.pipeline_mode<synchronous>, transform_indices = @transform_1, window_bounds = array<i64: 400, 128>}, {pipeline_mode = #tpu.pipeline_mode<synchronous>, transform_indices = @transform_2, window_bounds = array<i64: 1, 128>}, {pipeline_mode = #tpu.pipeline_mode<synchronous>, transform_indices = @transform_3, window_bounds = array<i64: 128, 128>}, {pipeline_mode = #tpu.pipeline_mode<synchronous>, transform_indices = @transform_4, window_bounds = array<i64: 1, 128>}, {pipeline_mode = #tpu.pipeline_mode<synchronous>, transform_indices = @transform_5, window_bounds = array<i64: 128, 10>}, {pipeline_mode = #tpu.pipeline_mode<synchronous>, transform_indices = @transform_6, window_bounds = array<i64: 1, 10>}, {transform_indices = @transform_7, window_bounds = array<i64: 2, 10>}]} {
    %c0 = arith.constant 0 : index
    %c0_0 = arith.constant 0 : index
    %0 = vector.load %arg1[%c0, %c0_0] : memref<2x400xbf16, #tpu.memory_space<vmem>>, vector<2x400xbf16>
    %c0_1 = arith.constant 0 : index
    %c0_2 = arith.constant 0 : index
    %1 = vector.load %arg2[%c0_1, %c0_2] : memref<400x128xbf16, #tpu.memory_space<vmem>>, vector<400x128xbf16>
    %cst = arith.constant dense<0.000000e+00> : vector<2x128xf32>
    %2 = tpu.matmul %0, %1, %cst {dimension_numbers = #tpu.dot_dimension_numbers<[1], [0], [0], [1], [0, 0, 1, 1], [], []>} : vector<2x400xbf16>, vector<400x128xbf16>, vector<2x128xf32> -> vector<2x128xf32>
    %c0_3 = arith.constant 0 : index
    %c0_4 = arith.constant 0 : index
    %3 = vector.load %arg3[%c0_3, %c0_4] : memref<1x128xf32, #tpu.memory_space<vmem>>, vector<1x128xf32>
    %4 = vector.broadcast %3 : vector<1x128xf32> to vector<2x128xf32>
    %5 = arith.addf %2, %4 : vector<2x128xf32>
    %cst_5 = arith.constant 0.000000e+00 : f32
    %6 = vector.broadcast %cst_5 : f32 to vector<2x128xf32>
    %7 = arith.maximumf %5, %6 : vector<2x128xf32>
    %8 = arith.truncf %7 : vector<2x128xf32> to vector<2x128xbf16>
    %c0_6 = arith.constant 0 : index
    %c0_7 = arith.constant 0 : index
    %9 = vector.load %arg4[%c0_6, %c0_7] : memref<128x128xbf16, #tpu.memory_space<vmem>>, vector<128x128xbf16>
    %cst_8 = arith.constant dense<0.000000e+00> : vector<2x128xf32>
    %10 = tpu.matmul %8, %9, %cst_8 {dimension_numbers = #tpu.dot_dimension_numbers<[1], [0], [0], [1], [0, 0, 1, 1], [], []>} : vector<2x128xbf16>, vector<128x128xbf16>, vector<2x128xf32> -> vector<2x128xf32>
    %c0_9 = arith.constant 0 : index
    %c0_10 = arith.constant 0 : index
    %11 = vector.load %arg5[%c0_9, %c0_10] : memref<1x128xf32, #tpu.memory_space<vmem>>, vector<1x128xf32>
    %12 = vector.broadcast %11 : vector<1x128xf32> to vector<2x128xf32>
    %13 = arith.addf %10, %12 : vector<2x128xf32>
    %cst_11 = arith.constant 0.000000e+00 : f32
    %14 = vector.broadcast %cst_11 : f32 to vector<2x128xf32>
    %15 = arith.maximumf %13, %14 : vector<2x128xf32>
    %16 = arith.truncf %15 : vector<2x128xf32> to vector<2x128xbf16>
    %c0_12 = arith.constant 0 : index
    %c0_13 = arith.constant 0 : index
    %17 = vector.load %arg6[%c0_12, %c0_13] : memref<128x10xbf16, #tpu.memory_space<vmem>>, vector<128x10xbf16>
    %cst_14 = arith.constant dense<0.000000e+00> : vector<2x10xf32>
    %18 = tpu.matmul %16, %17, %cst_14 {dimension_numbers = #tpu.dot_dimension_numbers<[1], [0], [0], [1], [0, 0, 1, 1], [], []>} : vector<2x128xbf16>, vector<128x10xbf16>, vector<2x10xf32> -> vector<2x10xf32>
    %c0_15 = arith.constant 0 : index
    %c0_16 = arith.constant 0 : index
    %19 = vector.load %arg7[%c0_15, %c0_16] : memref<1x10xf32, #tpu.memory_space<vmem>>, vector<1x10xf32>
    %20 = vector.broadcast %19 : vector<1x10xf32> to vector<2x10xf32>
    %21 = arith.addf %18, %20 : vector<2x10xf32>
    %cst_17 = arith.constant dense<0xFF800000> : vector<2xf32>
    %22 = vector.multi_reduction <maximumf>, %21, %cst_17 [1] : vector<2x10xf32> to vector<2xf32>
    %23 = vector.shape_cast %22 : vector<2xf32> to vector<2x1xf32>
    %24 = vector.broadcast %23 : vector<2x1xf32> to vector<2x10xf32>
    %25 = arith.subf %21, %24 : vector<2x10xf32>
    %26 = math.exp %25 : vector<2x10xf32>
    %cst_18 = arith.constant dense<0.000000e+00> : vector<2xf32>
    %27 = vector.multi_reduction <add>, %26, %cst_18 [1] : vector<2x10xf32> to vector<2xf32>
    %28 = vector.shape_cast %27 : vector<2xf32> to vector<2x1xf32>
    %29 = math.log %28 : vector<2x1xf32>
    %30 = vector.broadcast %29 : vector<2x1xf32> to vector<2x10xf32>
    %31 = arith.subf %25, %30 : vector<2x10xf32>
    %c0_19 = arith.constant 0 : index
    %c0_20 = arith.constant 0 : index
    %32 = vector.load %arg8[%c0_19, %c0_20] : memref<2x10xf32, #tpu.memory_space<vmem>>, vector<2x10xf32>
    tpu.vector_store %arg8[%c0_19, %c0_20], %31 {strides = array<i32>} : memref<2x10xf32, #tpu.memory_space<vmem>>, vector<2x10xf32>,
    return
  }
  func.func @transform_0(%arg0: i32) -> (i32, i32) {
    %c0_i32 = arith.constant 0 : i32
    %c0_i32_0 = arith.constant 0 : i32
    return %arg0, %c0_i32 : i32, i32
  }
  func.func @transform_1(%arg0: i32) -> (i32, i32) {
    %c0_i32 = arith.constant 0 : i32
    %c0_i32_0 = arith.constant 0 : i32
    %c0_i32_1 = arith.constant 0 : i32
    return %c0_i32, %c0_i32_0 : i32, i32
  }
  func.func @transform_2(%arg0: i32) -> (i32, i32) {
    %c0_i32 = arith.constant 0 : i32
    %c0_i32_0 = arith.constant 0 : i32
    %c0_i32_1 = arith.constant 0 : i32
    return %c0_i32, %c0_i32_0 : i32, i32
  }
  func.func @transform_3(%arg0: i32) -> (i32, i32) {
    %c0_i32 = arith.constant 0 : i32
    %c0_i32_0 = arith.constant 0 : i32
    %c0_i32_1 = arith.constant 0 : i32
    return %c0_i32, %c0_i32_0 : i32, i32
  }
  func.func @transform_4(%arg0: i32) -> (i32, i32) {
    %c0_i32 = arith.constant 0 : i32
    %c0_i32_0 = arith.constant 0 : i32
    %c0_i32_1 = arith.constant 0 : i32
    return %c0_i32, %c0_i32_0 : i32, i32
  }
  func.func @transform_5(%arg0: i32) -> (i32, i32) {
    %c0_i32 = arith.constant 0 : i32
    %c0_i32_0 = arith.constant 0 : i32
    %c0_i32_1 = arith.constant 0 : i32
    return %c0_i32, %c0_i32_0 : i32, i32
  }
  func.func @transform_6(%arg0: i32) -> (i32, i32) {
    %c0_i32 = arith.constant 0 : i32
    %c0_i32_0 = arith.constant 0 : i32
    %c0_i32_1 = arith.constant 0 : i32
    return %c0_i32, %c0_i32_0 : i32, i32
  }
  func.func @transform_7(%arg0: i32) -> (i32, i32) {
    %c0_i32 = arith.constant 0 : i32
    %c0_i32_0 = arith.constant 0 : i32
    return %arg0, %c0_i32 : i32, i32
  }
}

</mosaic_0001>

<bundles_post_ra>
// kernel: cnn_forward.3
= control target key start
LH: loop header
LB: loop body
LE: loop exit
PB: predicated region body
PF: predicated region fallthrough
CT: control target
= control target key end

     0   :  { %vm2169_vm0 = vcmask 44032   ;;  %s3780_s1 = inlined_call_operand.vmem [shape: bf16[128,6], index: 1, kind: input, shape index: {}]   ;;  %s3781_s0 = inlined_call_operand.vmem [shape: bf16[4,400,128], index: 0, kind: input, shape index: {}]   ;;  %s3782_s2 = inlined_call_operand.vmem [shape: f32[1,6], index: 2, kind: input, shape index: {}]   ;;  %s3783_s3 = inlined_call_operand.vmem [shape: bf16[400,6], index: 3, kind: output, shape index: {}]  }
   0x1   :  { %v2773_v0 = vld [vmem:[%s3780_s1 + $0x38] sm:$0xff]   ;;  %v2774_v1 = vld [vmem:[%s3780_s1 + $0x30] sm:$0xff]   ;;  %v2775_v2 = vld [vmem:[%s3780_s1 + $0x28] sm:$0xff]  }
   0x2   :  { %2541 = vmatprep.subr.bf16.mxu0 %v2773_v0  ;;  %2757 = vmatprep.subr.bf16.mxu1 %v2773_v0  ;;  %v2776_v3 = vld [vmem:[%s3780_s1 + $0x20] sm:$0xff]   ;;  %v2782_v5 = vld [vmem:[%s3781_s0 + $0x190] sm:$0xff]   ;;  %v2777_v6 = vld [vmem:[%s3780_s1 + $0x18] sm:$0xff]  }
   0x3   :  { %2542 = vmatpush3.bf16.msra.mxu0 %v2773_v0  ;;  %2765 = vmatpush3.bf16.msra.mxu1 %v2773_v0  ;;  %v2781_v4 = vld [vmem:[%s3781_s0] sm:$0xff]   ;;  %v2778_v7 = vld [vmem:[%s3780_s1 + $0x10] sm:$0xff]   ;;  %v2779_v8 = vld [vmem:[%s3780_s1 + $0x8] sm:$0xff]  }
   0x4   :  { %2543 = vmatprep.subr.bf16.mxu0 %v2774_v1  ;;  %2758 = vmatprep.subr.bf16.mxu1 %v2774_v1  ;;  %v2780_v9 = vld [vmem:[%s3780_s1] sm:$0xff]   ;;  %v2783_v10 = vld [vmem:[%s3781_s0 + $0x8] sm:$0xff]   ;;  %v2784_v11 = vld [vmem:[%s3781_s0 + $0x198] sm:$0xff]  }
   0x5   :  { %2557 = vmatprep.mubr.bf16.mxu0 %v2781_v4  ;;  %2657 = vmatprep.mubr.bf16.mxu1 %v2782_v5  ;;  %v2785_v12 = vld [vmem:[%s3781_s0 + $0x10] sm:$0xff]   ;;  %v2786_v13 = vld [vmem:[%s3781_s0 + $0x1a0] sm:$0xff]   ;;  %v2787_v14 = vld [vmem:[%s3781_s0 + $0x18] sm:$0xff]  }
   0x6   :  { %v2788_v15 = vld [vmem:[%s3781_s0 + $0x1a8] sm:$0xff]   ;;  %v2789_v16 = vld [vmem:[%s3781_s0 + $0x20] sm:$0xff]   ;;  %v2790_v17 = vld [vmem:[%s3781_s0 + $0x1b0] sm:$0xff]  }
   0x7   :  { %2544 = vmatpush3.bf16.msra.mxu0 %v2774_v1  ;;  %2766 = vmatpush3.bf16.msra.mxu1 %v2774_v1  ;;  %v2791_v18 = vld [vmem:[%s3781_s0 + $0x28] sm:$0xff]   ;;  %v2792_v19 = vld [vmem:[%s3781_s0 + $0x1b8] sm:$0xff]   ;;  %v2793_v20 = vld [vmem:[%s3781_s0 + $0x30] sm:$0xff]  }
   0x8   :  { %2545 = vmatprep.subr.bf16.mxu0 %v2775_v2  ;;  %2759 = vmatprep.subr.bf16.mxu1 %v2775_v2  ;;  %v2794_v21 = vld [vmem:[%s3781_s0 + $0x1c0] sm:$0xff]   ;;  %v2795_v22 = vld [vmem:[%s3781_s0 + $0x38] sm:$0xff]   ;;  %v2796_v23 = vld [vmem:[%s3781_s0 + $0x1c8] sm:$0xff]  }
   0x9   :  { %v2797_v24 = vld [vmem:[%s3781_s0 + $0x40] sm:$0xff]   ;;  %v2798_v25 = vld [vmem:[%s3781_s0 + $0x1d0] sm:$0xff]   ;;  %v2799_v26 = vld [vmem:[%s3781_s0 + $0x48] sm:$0xff]  }
   0xa   :  { %v2800_v27 = vld [vmem:[%s3781_s0 + $0x1d8] sm:$0xff]   ;;  %v2801_v28 = vld [vmem:[%s3781_s0 + $0x50] sm:$0xff]   ;;  %v2802_v29 = vld [vmem:[%s3781_s0 + $0x1e0] sm:$0xff]  }
   0xb   :  { %2546 = vmatpush3.bf16.msra.mxu0 %v2775_v2  ;;  %2767 = vmatpush3.bf16.msra.mxu1 %v2775_v2  ;;  %v2803_v30 = vld [vmem:[%s3781_s0 + $0x58] sm:$0xff]   ;;  %v2804_v31 = vld [vmem:[%s3781_s0 + $0x1e8] sm:$0xff]   ;;  %v2805_v32 = vld [vmem:[%s3781_s0 + $0x60] sm:$0xff]  }
   0xc   :  { %2547 = vmatprep.subr.bf16.mxu0 %v2776_v3  ;;  %2760 = vmatprep.subr.bf16.mxu1 %v2776_v3  ;;  %v2806_v33 = vld [vmem:[%s3781_s0 + $0x1f0] sm:$0xff]   ;;  %v2807_v34 = vld [vmem:[%s3781_s0 + $0x68] sm:$0xff]   ;;  %v2808_v35 = vld [vmem:[%s3781_s0 + $0x1f8] sm:$0xff]  }
   0xd   :  { %v2809_v36 = vld [vmem:[%s3781_s0 + $0x70] sm:$0xff]   ;;  %v2810_v37 = vld [vmem:[%s3781_s0 + $0x200] sm:$0xff]   ;;  %v2811_v38 = vld [vmem:[%s3781_s0 + $0x78] sm:$0xff]  }
   0xe   :  { %v2812_v39 = vld [vmem:[%s3781_s0 + $0x208] sm:$0xff]   ;;  %v2813_v40 = vld [vmem:[%s3781_s0 + $0x80] sm:$0xff]   ;;  %v2814_v41 = vld [vmem:[%s3781_s0 + $0x210] sm:$0xff]  }
   0xf   :  { %2548 = vmatpush3.bf16.msra.mxu0 %v2776_v3  ;;  %2768 = vmatpush3.bf16.msra.mxu1 %v2776_v3  ;;  %v2815_v42 = vld [vmem:[%s3781_s0 + $0x88] sm:$0xff]   ;;  %v2816_v43 = vld [vmem:[%s3781_s0 + $0x218] sm:$0xff]   ;;  %v2817_v44 = vld [vmem:[%s3781_s0 + $0x90] sm:$0xff]  }
  0x10   :  { %2549 = vmatprep.subr.bf16.mxu0 %v2777_v6  ;;  %2761 = vmatprep.subr.bf16.mxu1 %v2777_v6  ;;  %v2818_v45 = vld [vmem:[%s3781_s0 + $0x220] sm:$0xff]   ;;  %v2819_v46 = vld [vmem:[%s3781_s0 + $0x98] sm:$0xff]   ;;  %v2820_v47 = vld [vmem:[%s3781_s0 + $0x228] sm:$0xff]  }
  0x11   :  { %v2821_v48 = vld [vmem:[%s3781_s0 + $0xa0] sm:$0xff]   ;;  %v2822_v49 = vld [vmem:[%s3781_s0 + $0x230] sm:$0xff]   ;;  %v2823_v50 = vld [vmem:[%s3781_s0 + $0xa8] sm:$0xff]  }
  0x12   :  { %v2824_v51 = vld [vmem:[%s3781_s0 + $0x238] sm:$0xff]   ;;  %v2825_v52 = vld [vmem:[%s3781_s0 + $0xb0] sm:$0xff]   ;;  %v2826_v53 = vld [vmem:[%s3781_s0 + $0x240] sm:$0xff]  }
  0x13   :  { %2550 = vmatpush3.bf16.msra.mxu0 %v2777_v6  ;;  %2769 = vmatpush3.bf16.msra.mxu1 %v2777_v6  ;;  %v2827_v54 = vld [vmem:[%s3781_s0 + $0xb8] sm:$0xff]   ;;  %v2828_v55 = vld [vmem:[%s3781_s0 + $0x248] sm:$0xff]   ;;  %v2829_v56 = vld [vmem:[%s3781_s0 + $0xc0] sm:$0xff]  }
  0x14   :  { %2551 = vmatprep.subr.bf16.mxu0 %v2778_v7  ;;  %2762 = vmatprep.subr.bf16.mxu1 %v2778_v7  ;;  %v2830_v57 = vld [vmem:[%s3781_s0 + $0x250] sm:$0xff]   ;;  %v2831_v58 = vld [vmem:[%s3781_s0 + $0xc8] sm:$0xff]   ;;  %v2832_v59 = vld [vmem:[%s3781_s0 + $0x258] sm:$0xff]  }
  0x15   :  { %v2833_v60 = vld [vmem:[%s3781_s0 + $0xd0] sm:$0xff]   ;;  %v2834_v61 = vld [vmem:[%s3781_s0 + $0x260] sm:$0xff]   ;;  %v2835_v62 = vld [vmem:[%s3781_s0 + $0xd8] sm:$0xff]  }
  0x16   :  { %v2836_v63 = vld [vmem:[%s3781_s0 + $0x268] sm:$0xff]   ;;  %v2837_v0 = vld [vmem:[%s3781_s0 + $0xe0] sm:$0xff]   ;;  %v2838_v1 = vld [vmem:[%s3781_s0 + $0x270] sm:$0xff]  }
  0x17   :  { %2552 = vmatpush3.bf16.msra.mxu0 %v2778_v7  ;;  %2770 = vmatpush3.bf16.msra.mxu1 %v2778_v7  ;;  %v2839_v2 = vld [vmem:[%s3781_s0 + $0xe8] sm:$0xff]   ;;  %v2840_v3 = vld [vmem:[%s3781_s0 + $0x278] sm:$0xff]   ;;  %v2841_v4 = vld [vmem:[%s3781_s0 + $0xf0] sm:$0xff]  }
  0x18   :  { %2553 = vmatprep.subr.bf16.mxu0 %v2779_v8  ;;  %2763 = vmatprep.subr.bf16.mxu1 %v2779_v8  ;;  %v2842_v5 = vld [vmem:[%s3781_s0 + $0x280] sm:$0xff]   ;;  %v2843_v6 = vld [vmem:[%s3781_s0 + $0xf8] sm:$0xff]   ;;  %v2844_v7 = vld [vmem:[%s3781_s0 + $0x288] sm:$0xff]  }
  0x1b   :  { %2554 = vmatpush3.bf16.msra.mxu0 %v2779_v8  ;;  %2771 = vmatpush3.bf16.msra.mxu1 %v2779_v8  ;;  %v2845_v8 = vld [vmem:[%s3781_s0 + $0x100] sm:$0xff]  }
  0x1c   :  { %2555 = vmatprep.subr.bf16.mxu0 %v2780_v9  ;;  %2764 = vmatprep.subr.bf16.mxu1 %v2780_v9 }
  0x1f   :  { %2556 = vmatpush3.bf16.msra.mxu0 %v2780_v9  ;;  %2772 = vmatpush3.bf16.msra.mxu1 %v2780_v9  ;;  %v2846_v9 = vld [vmem:[%s3781_s0 + $0x290] sm:$0xff]  }
  0x22   :  { %2558 = vmatmul.mubr.bf16.vlgmr.msra.gmra.mxu0 %v2783_v10  ;;  %2658 = vmatmul.mubr.bf16.vlgmr.msra.gmra.mxu1 %v2784_v11  ;;  %v2847_v10 = vld [vmem:[%s3781_s0 + $0x108] sm:$0xff]   ;;  %v2848_v11 = vld [vmem:[%s3781_s0 + $0x298] sm:$0xff]  }
  0x23   :  { %2561 = vmatprep.mubr.bf16.mxu0 %v2785_v12  ;;  %2661 = vmatprep.mubr.bf16.mxu1 %v2786_v13  ;;  %v2849_v12 = vld [vmem:[%s3781_s0 + $0x110] sm:$0xff]   ;;  %v2850_v13 = vld [vmem:[%s3781_s0 + $0x2a0] sm:$0xff]  }
  0x2a   :  { %2562 = vmatmul.mubr.bf16.gmra.mxu0 %v2787_v14  ;;  %2662 = vmatmul.mubr.bf16.gmra.mxu1 %v2788_v15  ;;  %v2851_v14 = vld [vmem:[%s3781_s0 + $0x118] sm:$0xff]   ;;  %v2852_v15 = vld [vmem:[%s3781_s0 + $0x2a8] sm:$0xff]  }
  0x2b   :  { %2565 = vmatprep.mubr.bf16.mxu0 %v2789_v16  ;;  %2665 = vmatprep.mubr.bf16.mxu1 %v2790_v17  ;;  %v2853_v16 = vld [vmem:[%s3781_s0 + $0x120] sm:$0xff]   ;;  %v2854_v17 = vld [vmem:[%s3781_s0 + $0x2b0] sm:$0xff]  }
  0x32   :  { %2566 = vmatmul.mubr.bf16.gmra.mxu0 %v2791_v18  ;;  %2666 = vmatmul.mubr.bf16.gmra.mxu1 %v2792_v19  ;;  %v2855_v18 = vld [vmem:[%s3781_s0 + $0x128] sm:$0xff]   ;;  %v2856_v19 = vld [vmem:[%s3781_s0 + $0x2b8] sm:$0xff]  }
  0x33   :  { %2569 = vmatprep.mubr.bf16.mxu0 %v2793_v20  ;;  %2669 = vmatprep.mubr.bf16.mxu1 %v2794_v21  ;;  %v2857_v20 = vld [vmem:[%s3781_s0 + $0x130] sm:$0xff]   ;;  %v2858_v21 = vld [vmem:[%s3781_s0 + $0x2c0] sm:$0xff]  }
  0x3a   :  { %2570 = vmatmul.mubr.bf16.gmra.mxu0 %v2795_v22  ;;  %2670 = vmatmul.mubr.bf16.gmra.mxu1 %v2796_v23  ;;  %v2859_v22 = vld [vmem:[%s3781_s0 + $0x138] sm:$0xff]   ;;  %v2860_v23 = vld [vmem:[%s3781_s0 + $0x2c8] sm:$0xff]  }
  0x3b   :  { %2573 = vmatprep.mubr.bf16.mxu0 %v2797_v24  ;;  %2673 = vmatprep.mubr.bf16.mxu1 %v2798_v25  ;;  %v2861_v24 = vld [vmem:[%s3781_s0 + $0x140] sm:$0xff]   ;;  %v2862_v25 = vld [vmem:[%s3781_s0 + $0x2d0] sm:$0xff]  }
  0x42   :  { %2574 = vmatmul.mubr.bf16.gmra.mxu0 %v2799_v26  ;;  %2674 = vmatmul.mubr.bf16.gmra.mxu1 %v2800_v27  ;;  %v2863_v26 = vld [vmem:[%s3781_s0 + $0x148] sm:$0xff]   ;;  %v2864_v27 = vld [vmem:[%s3781_s0 + $0x2d8] sm:$0xff]  }
  0x43   :  { %2577 = vmatprep.mubr.bf16.mxu0 %v2801_v28  ;;  %2677 = vmatprep.mubr.bf16.mxu1 %v2802_v29  ;;  %v2865_v28 = vld [vmem:[%s3781_s0 + $0x150] sm:$0xff]   ;;  %v2866_v29 = vld [vmem:[%s3781_s0 + $0x2e0] sm:$0xff]  }
  0x4a   :  { %2578 = vmatmul.mubr.bf16.gmra.mxu0 %v2803_v30  ;;  %2678 = vmatmul.mubr.bf16.gmra.mxu1 %v2804_v31  ;;  %v2867_v30 = vld [vmem:[%s3781_s0 + $0x158] sm:$0xff]   ;;  %v2868_v31 = vld [vmem:[%s3781_s0 + $0x2e8] sm:$0xff]  }
  0x4b   :  { %2581 = vmatprep.mubr.bf16.mxu0 %v2805_v32  ;;  %2681 = vmatprep.mubr.bf16.mxu1 %v2806_v33  ;;  %v2869_v32 = vld [vmem:[%s3781_s0 + $0x160] sm:$0xff]   ;;  %v2870_v33 = vld [vmem:[%s3781_s0 + $0x2f0] sm:$0xff]  }
  0x52   :  { %2582 = vmatmul.mubr.bf16.gmra.mxu0 %v2807_v34  ;;  %2682 = vmatmul.mubr.bf16.gmra.mxu1 %v2808_v35  ;;  %v2871_v34 = vld [vmem:[%s3781_s0 + $0x168] sm:$0xff]   ;;  %v2872_v35 = vld [vmem:[%s3781_s0 + $0x2f8] sm:$0xff]  }
  0x53   :  { %2585 = vmatprep.mubr.bf16.mxu0 %v2809_v36  ;;  %2685 = vmatprep.mubr.bf16.mxu1 %v2810_v37  ;;  %v2873_v36 = vld [vmem:[%s3781_s0 + $0x170] sm:$0xff]   ;;  %v2874_v37 = vld [vmem:[%s3781_s0 + $0x300] sm:$0xff]  }
  0x5a   :  { %2586 = vmatmul.mubr.bf16.gmra.mxu0 %v2811_v38  ;;  %2686 = vmatmul.mubr.bf16.gmra.mxu1 %v2812_v39  ;;  %v2875_v38 = vld [vmem:[%s3781_s0 + $0x178] sm:$0xff]   ;;  %v2876_v39 = vld [vmem:[%s3781_s0 + $0x308] sm:$0xff]  }
  0x5b   :  { %2589 = vmatprep.mubr.bf16.mxu0 %v2813_v40  ;;  %2689 = vmatprep.mubr.bf16.mxu1 %v2814_v41  ;;  %v2877_v40 = vld [vmem:[%s3781_s0 + $0x180] sm:$0xff]   ;;  %v2878_v41 = vld [vmem:[%s3781_s0 + $0x310] sm:$0xff]  }
  0x62   :  { %2590 = vmatmul.mubr.bf16.gmra.mxu0 %v2815_v42  ;;  %2690 = vmatmul.mubr.bf16.gmra.mxu1 %v2816_v43  ;;  %v2879_v42 = vld [vmem:[%s3781_s0 + $0x188] sm:$0xff]   ;;  %v2880_v43 = vld [vmem:[%s3781_s0 + $0x318] sm:$0xff]  }
  0x63   :  { %2593 = vmatprep.mubr.bf16.mxu0 %v2817_v44  ;;  %2693 = vmatprep.mubr.bf16.mxu1 %v2818_v45 }
  0x6a   :  { %2594 = vmatmul.mubr.bf16.gmra.mxu0 %v2819_v46  ;;  %2694 = vmatmul.mubr.bf16.gmra.mxu1 %v2820_v47 }
  0x6b   :  { %2597 = vmatprep.mubr.bf16.mxu0 %v2821_v48  ;;  %2697 = vmatprep.mubr.bf16.mxu1 %v2822_v49 }
  0x72   :  { %2598 = vmatmul.mubr.bf16.gmra.mxu0 %v2823_v50  ;;  %2698 = vmatmul.mubr.bf16.gmra.mxu1 %v2824_v51 }
  0x73   :  { %2601 = vmatprep.mubr.bf16.mxu0 %v2825_v52  ;;  %2701 = vmatprep.mubr.bf16.mxu1 %v2826_v53 }
  0x7a   :  { %2602 = vmatmul.mubr.bf16.gmra.mxu0 %v2827_v54  ;;  %2702 = vmatmul.mubr.bf16.gmra.mxu1 %v2828_v55 }
  0x7b   :  { %2605 = vmatprep.mubr.bf16.mxu0 %v2829_v56  ;;  %2705 = vmatprep.mubr.bf16.mxu1 %v2830_v57 }
  0x82   :  { %2606 = vmatmul.mubr.bf16.gmra.mxu0 %v2831_v58  ;;  %2706 = vmatmul.mubr.bf16.gmra.mxu1 %v2832_v59 }
  0x83   :  { %2609 = vmatprep.mubr.bf16.mxu0 %v2833_v60  ;;  %2709 = vmatprep.mubr.bf16.mxu1 %v2834_v61 }
  0x8a   :  { %2610 = vmatmul.mubr.bf16.gmra.mxu0 %v2835_v62  ;;  %2710 = vmatmul.mubr.bf16.gmra.mxu1 %v2836_v63 }
  0x8b   :  { %2613 = vmatprep.mubr.bf16.mxu0 %v2837_v0  ;;  %2713 = vmatprep.mubr.bf16.mxu1 %v2838_v1 }
  0x92   :  { %2614 = vmatmul.mubr.bf16.gmra.mxu0 %v2839_v2  ;;  %2714 = vmatmul.mubr.bf16.gmra.mxu1 %v2840_v3 }
  0x93   :  { %2617 = vmatprep.mubr.bf16.mxu0 %v2841_v4  ;;  %2717 = vmatprep.mubr.bf16.mxu1 %v2842_v5 }
  0x9a   :  { %2618 = vmatmul.mubr.bf16.gmra.mxu0 %v2843_v6  ;;  %2718 = vmatmul.mubr.bf16.gmra.mxu1 %v2844_v7 }
  0x9b   :  { %2621 = vmatprep.mubr.bf16.mxu0 %v2845_v8  ;;  %2721 = vmatprep.mubr.bf16.mxu1 %v2846_v9 }
  0xa2   :  { %2622 = vmatmul.mubr.bf16.gmra.mxu0 %v2847_v10  ;;  %2722 = vmatmul.mubr.bf16.gmra.mxu1 %v2848_v11 }
  0xa3   :  { %2625 = vmatprep.mubr.bf16.mxu0 %v2849_v12  ;;  %2725 = vmatprep.mubr.bf16.mxu1 %v2850_v13 }
  0xaa   :  { %2626 = vmatmul.mubr.bf16.gmra.mxu0 %v2851_v14  ;;  %2726 = vmatmul.mubr.bf16.gmra.mxu1 %v2852_v15 }
  0xab   :  { %2629 = vmatprep.mubr.bf16.mxu0 %v2853_v16  ;;  %2729 = vmatprep.mubr.bf16.mxu1 %v2854_v17 }
  0xb2   :  { %2630 = vmatmul.mubr.bf16.gmra.mxu0 %v2855_v18  ;;  %2730 = vmatmul.mubr.bf16.gmra.mxu1 %v2856_v19 }
  0xb3   :  { %2633 = vmatprep.mubr.bf16.mxu0 %v2857_v20  ;;  %2733 = vmatprep.mubr.bf16.mxu1 %v2858_v21 }
  0xba   :  { %2634 = vmatmul.mubr.bf16.gmra.mxu0 %v2859_v22  ;;  %2734 = vmatmul.mubr.bf16.gmra.mxu1 %v2860_v23 }
  0xbb   :  { %2637 = vmatprep.mubr.bf16.mxu0 %v2861_v24  ;;  %2737 = vmatprep.mubr.bf16.mxu1 %v2862_v25 }
  0xc2   :  { %2638 = vmatmul.mubr.bf16.gmra.mxu0 %v2863_v26  ;;  %2738 = vmatmul.mubr.bf16.gmra.mxu1 %v2864_v27 }
  0xc3   :  { %2641 = vmatprep.mubr.bf16.mxu0 %v2865_v28  ;;  %2741 = vmatprep.mubr.bf16.mxu1 %v2866_v29 }
  0xca   :  { %2642 = vmatmul.mubr.bf16.gmra.mxu0 %v2867_v30  ;;  %2742 = vmatmul.mubr.bf16.gmra.mxu1 %v2868_v31 }
  0xcb   :  { %2645 = vmatprep.mubr.bf16.mxu0 %v2869_v32  ;;  %2745 = vmatprep.mubr.bf16.mxu1 %v2870_v33 }
  0xd2   :  { %2646 = vmatmul.mubr.bf16.gmra.mxu0 %v2871_v34  ;;  %2746 = vmatmul.mubr.bf16.gmra.mxu1 %v2872_v35 }
  0xd3   :  { %2649 = vmatprep.mubr.bf16.mxu0 %v2873_v36  ;;  %2749 = vmatprep.mubr.bf16.mxu1 %v2874_v37 }
  0xda   :  { %2650 = vmatmul.mubr.bf16.gmra.mxu0 %v2875_v38  ;;  %2750 = vmatmul.mubr.bf16.gmra.mxu1 %v2876_v39 }
  0xdb   :  { %2653 = vmatprep.mubr.bf16.mxu0 %v2877_v40  ;;  %2753 = vmatprep.mubr.bf16.mxu1 %v2878_v41 }
  0xe2   :  { %v3225_v44 = vpop.f32.mrf.mxu0  ;;  %2654 = vmatmul.mubr.bf16.gmra.mxu0 %v2879_v42  ;;  %v3227_v45 = vpop.f32.mrf.mxu1  ;;  %2754 = vmatmul.mubr.bf16.gmra.mxu1 %v2880_v43 }
  0xe4   :  { %v3229_v46 = vpop.f32.mrf.mxu0  ;;  %v3231_v47 = vpop.f32.mrf.mxu1 }
  0xe6   :  { %v3233_v48 = vpop.f32.mrf.mxu0  ;;  %v3235_v49 = vpop.f32.mrf.mxu1 }
  0xe8   :  { %v3237_v50 = vpop.f32.mrf.mxu0  ;;  %v3239_v51 = vpop.f32.mrf.mxu1 }
  0xea   :  { %v3241_v52 = vpop.f32.mrf.mxu0  ;;  %v3243_v53 = vpop.f32.mrf.mxu1 }
  0xec   :  { %v3245_v54 = vpop.f32.mrf.mxu0  ;;  %v3247_v55 = vpop.f32.mrf.mxu1 }
  0xee   :  { %v3249_v56 = vpop.f32.mrf.mxu0  ;;  %v3251_v57 = vpop.f32.mrf.mxu1 }
  0xf0   :  { %v3253_v58 = vpop.f32.mrf.mxu0  ;;  %v3255_v59 = vpop.f32.mrf.mxu1 }
  0xf2   :  { %v3257_v60 = vpop.f32.mrf.mxu0  ;;  %v3259_v61 = vpop.f32.mrf.mxu1 }
  0xf4   :  { %v3261_v62 = vpop.f32.mrf.mxu0  ;;  %v3263_v63 = vpop.f32.mrf.mxu1 }
  0xf6   :  { %v3265_v0 = vpop.f32.mrf.mxu0  ;;  %v3267_v1 = vpop.f32.mrf.mxu1 }
  0xf8   :  { %v3269_v2 = vpop.f32.mrf.mxu0  ;;  %v3271_v3 = vpop.f32.mrf.mxu1 }
  0xfa   :  { %v3273_v4 = vpop.f32.mrf.mxu0  ;;  %v3275_v5 = vpop.f32.mrf.mxu1 }
  0xfc   :  { %v3277_v6 = vpop.f32.mrf.mxu0  ;;  %v3279_v7 = vpop.f32.mrf.mxu1 }
  0xfe   :  { %v3281_v8 = vpop.f32.mrf.mxu0  ;;  %v3283_v9 = vpop.f32.mrf.mxu1 }
 0x100   :  { %v3285_v10 = vpop.f32.mrf.mxu0  ;;  %v3287_v11 = vpop.f32.mrf.mxu1 }
 0x102   :  { %v3289_v12 = vpop.f32.mrf.mxu0  ;;  %v3291_v13 = vpop.f32.mrf.mxu1 }
 0x104   :  { %v3293_v14 = vpop.f32.mrf.mxu0  ;;  %v3295_v15 = vpop.f32.mrf.mxu1 }
 0x106   :  { %v3297_v16 = vpop.f32.mrf.mxu0  ;;  %v3299_v17 = vpop.f32.mrf.mxu1 }
 0x108   :  { %v3301_v18 = vpop.f32.mrf.mxu0  ;;  %v3303_v19 = vpop.f32.mrf.mxu1 }
 0x10a   :  { %v3305_v20 = vpop.f32.mrf.mxu0  ;;  %v3307_v21 = vpop.f32.mrf.mxu1 }
 0x10c   :  { %v3309_v22 = vpop.f32.mrf.mxu0  ;;  %v3311_v23 = vpop.f32.mrf.mxu1 }
 0x10e   :  { %v3313_v24 = vpop.f32.mrf.mxu0  ;;  %v3315_v25 = vpop.f32.mrf.mxu1 }
 0x10f   :  { %3784 = vst [vmem:[#allocation2_spill] sm:$0xff] %v3313_v24  ;;  %3785 = vst [vmem:[#allocation3_spill] sm:$0xff] %v3315_v25 }
 0x110   :  { %v3317_v26 = vpop.f32.mrf.mxu0  ;;  %v3319_v27 = vpop.f32.mrf.mxu1 }
 0x112   :  { %v3321_v28 = vpop.f32.mrf.mxu0  ;;  %v3323_v29 = vpop.f32.mrf.mxu1 }
 0x113   :  { %3786 = vst [vmem:[#allocation4_spill] sm:$0xff] %v3321_v28  ;;  %3787 = vst [vmem:[#allocation5_spill] sm:$0xff] %v3323_v29 }
 0x114   :  { %v3325_v30 = vpop.f32.mrf.mxu0  ;;  %v3327_v31 = vpop.f32.mrf.mxu1 }
 0x116   :  { %v3329_v32 = vpop.f32.mrf.mxu0  ;;  %v3331_v33 = vpop.f32.mrf.mxu1 }
 0x117   :  { %3788 = vst [vmem:[#allocation6_spill] sm:$0xff] %v3329_v32  ;;  %3789 = vst [vmem:[#allocation7_spill] sm:$0xff] %v3331_v33 }
 0x118   :  { %v3333_v34 = vpop.f32.mrf.mxu0  ;;  %v3335_v35 = vpop.f32.mrf.mxu1 }
 0x119   :  { %3790 = vst [vmem:[#allocation8_spill] sm:$0xff] %v3335_v35 }
 0x11a   :  { %v3337_v36 = vpop.f32.mrf.mxu0  ;;  %v3339_v37 = vpop.f32.mrf.mxu1 }
 0x11b   :  { %3791 = vst [vmem:[#allocation9_spill] sm:$0xff] %v3337_v36  ;;  %3792 = vst [vmem:[#allocation10_spill] sm:$0xff] %v3339_v37 }
 0x11c   :  { %v3341_v38 = vpop.f32.mrf.mxu0  ;;  %v3343_v39 = vpop.f32.mrf.mxu1 }
 0x11d   :  { %3793 = vst [vmem:[#allocation11_spill] sm:$0xff] %v3341_v38  ;;  %3794 = vst [vmem:[#allocation12_spill] sm:$0xff] %v3343_v39 }
 0x11e   :  { %v3345_v40 = vpop.f32.mrf.mxu0  ;;  %v3347_v41 = vpop.f32.mrf.mxu1 }
 0x11f   :  { %3795 = vst [vmem:[#allocation13_spill] sm:$0xff] %v3345_v40  ;;  %3796 = vst [vmem:[#allocation14_spill] sm:$0xff] %v3347_v41 }
 0x120   :  { %v3349_v42 = vpop.f32.mrf.mxu0  ;;  %v3351_v43 = vpop.f32.mrf.mxu1 }
 0x121   :  { %3797 = vst [vmem:[#allocation15_spill] sm:$0xff] %v3349_v42  ;;  %3798 = vst [vmem:[#allocation16_spill] sm:$0xff] %v3351_v43 }
 0x122   :  { %v3353_v33 = vpop.f32.mrf.mxu0  ;;  %v3355_v32 = vpop.f32.mrf.mxu1 }
 0x123   :  { %3799 = vst [vmem:[#allocation17_spill] sm:$0xff] %v3353_v33  ;;  %3800 = vst [vmem:[#allocation18_spill] sm:$0xff] %v3355_v32 }
 0x124   :  { %v3357_v29 = vpop.f32.mrf.mxu0  ;;  %v3359_v36 = vpop.f32.mrf.mxu1 }
 0x125   :  { %3801 = vst [vmem:[#allocation19_spill] sm:$0xff] %v3357_v29  ;;  %3802 = vst [vmem:[#allocation20_spill] sm:$0xff] %v3359_v36 }
 0x126   :  { %v3361_v37 = vpop.f32.mrf.mxu0  ;;  %v3363_v28 = vpop.f32.mrf.mxu1 }
 0x127   :  { %3803 = vst [vmem:[#allocation21_spill] sm:$0xff] %v3361_v37  ;;  %3804 = vst [vmem:[#allocation22_spill] sm:$0xff] %v3363_v28 }
 0x128   :  { %v3365_v39 = vpop.f32.mrf.mxu0  ;;  %v3367_v40 = vpop.f32.mrf.mxu1 }
 0x129   :  { %3805 = vst [vmem:[#allocation23_spill] sm:$0xff] %v3365_v39  ;;  %3806 = vst [vmem:[#allocation24_spill] sm:$0xff] %v3367_v40 }
 0x12a   :  { %v3369_v41 = vpop.f32.mrf.mxu0  ;;  %v3371_v42 = vpop.f32.mrf.mxu1 }
 0x12b   :  { %3807 = vst [vmem:[#allocation25_spill] sm:$0xff] %v3369_v41  ;;  %3808 = vst [vmem:[#allocation26_spill] sm:$0xff] %v3371_v42 }
 0x12c   :  { %v3373_v43 = vpop.f32.mrf.mxu0  ;;  %v3375_v33 = vpop.f32.mrf.mxu1 }
 0x12d   :  { %3809 = vst [vmem:[#allocation27_spill] sm:$0xff] %v3373_v43  ;;  %3810 = vst [vmem:[#allocation28_spill] sm:$0xff] %v3375_v33 }
 0x12e   :  { %v3377_v32 = vpop.f32.mrf.mxu0  ;;  %v3379_v29 = vpop.f32.mrf.mxu1 }
 0x12f   :  { %3811 = vst [vmem:[#allocation29_spill] sm:$0xff] %v3377_v32  ;;  %3812 = vst [vmem:[#allocation30_spill] sm:$0xff] %v3379_v29 }
 0x130   :  { %v3381_v36 = vpop.f32.mrf.mxu0  ;;  %v3383_v37 = vpop.f32.mrf.mxu1 }
 0x131   :  { %3813 = vst [vmem:[#allocation31_spill] sm:$0xff] %v3381_v36  ;;  %3814 = vst [vmem:[#allocation32_spill] sm:$0xff] %v3383_v37 }
 0x132   :  { %v3385_v28 = vpop.f32.mrf.mxu0  ;;  %v3387_v39 = vpop.f32.mrf.mxu1 }
 0x133   :  { %3815 = vst [vmem:[#allocation33_spill] sm:$0xff] %v3385_v28  ;;  %3816 = vst [vmem:[#allocation34_spill] sm:$0xff] %v3387_v39 }
 0x134   :  { %v3389_v40 = vpop.f32.mrf.mxu0  ;;  %v3391_v41 = vpop.f32.mrf.mxu1 }
 0x135   :  { %3817 = vst [vmem:[#allocation35_spill] sm:$0xff] %v3389_v40  ;;  %3818 = vst [vmem:[#allocation36_spill] sm:$0xff] %v3391_v41 }
 0x136   :  { %v3393_v42 = vpop.f32.mrf.mxu0  ;;  %v3395_v43 = vpop.f32.mrf.mxu1 }
 0x137   :  { %3819 = vst [vmem:[#allocation37_spill] sm:$0xff] %v3393_v42  ;;  %3820 = vst [vmem:[#allocation38_spill] sm:$0xff] %v3395_v43 }
 0x138   :  { %v3397_v33 = vpop.f32.mrf.mxu0  ;;  %v3399_v32 = vpop.f32.mrf.mxu1 }
 0x139   :  { %3821 = vst [vmem:[#allocation39_spill] sm:$0xff] %v3397_v33  ;;  %3822 = vst [vmem:[#allocation40_spill] sm:$0xff] %v3399_v32 }
 0x13a   :  { %v3401_v29 = vpop.f32.mrf.mxu0  ;;  %v3403_v36 = vpop.f32.mrf.mxu1 }
 0x13b   :  { %3823 = vst [vmem:[#allocation41_spill] sm:$0xff] %v3401_v29  ;;  %3824 = vst [vmem:[#allocation42_spill] sm:$0xff] %v3403_v36  ;;  %v3422_v36 = vld [vmem:[%s3782_s2] ss:$0 sm:$0xff] }
 0x13c   :  { %v3405_v37 = vpop.f32.mrf.mxu0  ;;  %v3407_v28 = vpop.f32.mrf.mxu1 }
 0x13d   :  { %3825 = vst [vmem:[#allocation43_spill] sm:$0xff] %v3405_v37  ;;  %3826 = vst [vmem:[#allocation44_spill] sm:$0xff] %v3407_v28 }
 0x13e   :  { %v3409_v39 = vpop.f32.mrf.mxu0  ;;  %v3411_v40 = vpop.f32.mrf.mxu1 }
 0x13f   :  { %3827 = vst [vmem:[#allocation45_spill] sm:$0xff] %v3409_v39  ;;  %3828 = vst [vmem:[#allocation46_spill] sm:$0xff] %v3411_v40 }
 0x140   :  { %v3413_v41 = vpop.f32.mrf.mxu0  ;;  %v3415_v42 = vpop.f32.mrf.mxu1 }
 0x141   :  { %3829 = vst [vmem:[#allocation47_spill] sm:$0xff] %v3413_v41  ;;  %3830 = vst [vmem:[#allocation48_spill] sm:$0xff] %v3415_v42 }
 0x142   :  { %v2607_v43 = vpop.f32.mrf.mxu0  ;;  %v2707_v33 = vpop.f32.mrf.mxu1 }
 0x143   :  { %v1712_v32 = vmax.f32 %v3229_v46, %v2607_v43  ;;  %v1762_v29 = vmax.f32 %v3231_v47, %v2707_v33 }
 0x144   :  { %v3424_v28 = vpop.f32.mrf.mxu0  ;;  %v3426_v39 = vpop.f32.mrf.mxu1 }
 0x145   :  { %3831 = vst [vmem:[#allocation49_spill] sm:$0xff] %v3424_v28  ;;  %3832 = vst [vmem:[#allocation50_spill] sm:$0xff] %v3426_v39  ;;  %v1812_v40 = vmax.f32 %v1712_v32, %v1762_v29 }
 0x146   :  { %v2608_v37 = vpop.f32.mrf.mxu0  ;;  %v2708_v41 = vpop.f32.mrf.mxu1 }
 0x147   :  { %v1869_v42 = vadd.f32 %v3422_v36, %v1812_v40  ;;  %v1713_v38 = vmax.f32 %v3237_v50, %v2608_v37  ;;  %v1763_v46 = vmax.f32 %v3239_v51, %v2708_v41 }
 0x148   :  { %v3431_v43 = vpop.f32.mrf.mxu0  ;;  %v3433_v47 = vpop.f32.mrf.mxu1 }
 0x149   :  { %3833 = vst [vmem:[#allocation51_spill] sm:$0xff] %v3433_v47  ;;  %v1919_v33 = vmax.f32 %v1869_v42, 0.0  ;;  %v1813_v25 = vmax.f32 %v1713_v38, %v1763_v46 }
 0x14a   :  { %v2611_v24 = vpop.f32.mrf.mxu0  ;;  %v2711_v28 = vpop.f32.mrf.mxu1 }
 0x14b   :  { %v2383_v35 = vpack.c.bf16 %v1919_v33, %v1919_v33  ;;  %v1870_v29 = vadd.f32 %v3422_v36, %v1813_v25  ;;  %v1716_v32 = vmax.f32 %v3245_v54, %v2611_v24  ;;  %v1766_v40 = vmax.f32 %v3247_v55, %v2711_v28 }
 0x14c   :  { %v1121_v39 = vpop.f32.mrf.mxu0  ;;  %v1521_v50 = vpop.f32.mrf.mxu1 }
 0x14d   :  { %2170 = vst.msk [vmem:[%s3783_s3] sm:$0xf] %vm2169_vm0, %v2383_v35  ;;  %v1920_v51 = vmax.f32 %v1870_v29, 0.0  ;;  %v1816_v37 = vmax.f32 %v1716_v32, %v1766_v40  ;;  %v1714_v38 = vmax.f32 %v3225_v44, %v1121_v39  ;;  %v1764_v41 = vmax.f32 %v3227_v45, %v1521_v50 }
 0x14e   :  { %v2612_v42 = vpop.f32.mrf.mxu0  ;;  %v2712_v46 = vpop.f32.mrf.mxu1 }
 0x14f   :  { %v2384_v25 = vpack.c.bf16 %v1920_v51, %v1920_v51  ;;  %v1873_v54 = vadd.f32 %v3422_v36, %v1816_v37  ;;  %v1814_v24 = vmax.f32 %v1714_v38, %v1764_v41  ;;  %v1717_v55 = vmax.f32 %v3253_v58, %v2612_v42 }
 0x150   :  { %v1767_v28 = vmax.f32 %v3255_v59, %v2712_v46  ;;  %v1124_v33 = vpop.f32.mrf.mxu0  ;;  %v1524_v47 = vpop.f32.mrf.mxu1 }
 0x151   :  { %2171 = vst.msk [vmem:[%s3783_s3 + $0x4] sm:$0xf] %vm2169_vm0, %v2384_v25  ;;  %v1923_v44 = vmax.f32 %v1873_v54, 0.0  ;;  %v1871_v45 = vadd.f32 %v3422_v36, %v1814_v24  ;;  %v1715_v35 = vmax.f32 %v3233_v48, %v1124_v33  ;;  %v1765_v39 = vmax.f32 %v3235_v49, %v1524_v47 }
 0x152   :  { %v1817_v29 = vmax.f32 %v1717_v55, %v1767_v28  ;;  %v2615_v32 = vpop.f32.mrf.mxu0  ;;  %v2715_v40 = vpop.f32.mrf.mxu1 }
 0x153   :  { %v2387_v58 = vpack.c.bf16 %v1923_v44, %v1923_v44  ;;  %v1921_v50 = vmax.f32 %v1871_v45, 0.0  ;;  %v1815_v59 = vmax.f32 %v1715_v35, %v1765_v39  ;;  %v1720_v51 = vmax.f32 %v3261_v62, %v2615_v32 }
 0x154   :  { %v1874_v37 = vadd.f32 %v3422_v36, %v1817_v29  ;;  %v1770_v38 = vmax.f32 %v3263_v63, %v2715_v40  ;;  %v1137_v41 = vpop.f32.mrf.mxu0  ;;  %v1537_v42 = vpop.f32.mrf.mxu1 }
 0x155   :  { %2174 = vst.msk [vmem:[%s3783_s3 + $0x10] sm:$0xf] %vm2169_vm0, %v2387_v58  ;;  %v2385_v48 = vpack.c.bf16 %v1921_v50, %v1921_v50  ;;  %v1872_v49 = vadd.f32 %v3422_v36, %v1815_v59  ;;  %v1718_v47 = vmax.f32 %v3241_v52, %v1137_v41  ;;  %v1768_v46 = vmax.f32 %v3243_v53, %v1537_v42 }
 0x156   :  { %v1924_v25 = vmax.f32 %v1874_v37, 0.0  ;;  %v1820_v62 = vmax.f32 %v1720_v51, %v1770_v38  ;;  %v2616_v54 = vpop.f32.mrf.mxu0  ;;  %v2716_v24 = vpop.f32.mrf.mxu1 }
 0x157   :  { %2172 = vst.msk [vmem:[%s3783_s3 + $0x8] sm:$0xf] %vm2169_vm0, %v2385_v48  ;;  %v1922_v63 = vmax.f32 %v1872_v49, 0.0  ;;  %v1818_v55 = vmax.f32 %v1718_v47, %v1768_v46  ;;  %v1721_v28 = vmax.f32 %v3269_v2, %v2616_v54  ;;  %v1771_v33 = vmax.f32 %v3271_v3, %v2716_v24 }
 0x158   :  { %v2388_v44 = vpack.c.bf16 %v1924_v25, %v1924_v25  ;;  %v1877_v52 = vadd.f32 %v3422_v36, %v1820_v62  ;;  %v1140_v45 = vpop.f32.mrf.mxu0  ;;  %v1540_v53 = vpop.f32.mrf.mxu1 }
 0x159   :  { %v2386_v35 = vpack.c.bf16 %v1922_v63, %v1922_v63  ;;  %v1875_v39 = vadd.f32 %v3422_v36, %v1818_v55  ;;  %v1821_v29 = vmax.f32 %v1721_v28, %v1771_v33  ;;  %v1719_v32 = vmax.f32 %v3249_v56, %v1140_v45 }
 0x15a   :  { %2175 = vst.msk [vmem:[%s3783_s3 + $0x14] sm:$0xf] %vm2169_vm0, %v2388_v44  ;;  %v1927_v40 = vmax.f32 %v1877_v52, 0.0  ;;  %v1769_v2 = vmax.f32 %v3251_v57, %v1540_v53  ;;  %v2619_v3 = vpop.f32.mrf.mxu0  ;;  %v2719_v58 = vpop.f32.mrf.mxu1 }
 0x15b   :  { %2173 = vst.msk [vmem:[%s3783_s3 + $0xc] sm:$0xf] %vm2169_vm0, %v2386_v35  ;;  %v1925_v50 = vmax.f32 %v1875_v39, 0.0  ;;  %v1878_v59 = vadd.f32 %v3422_v36, %v1821_v29  ;;  %v1724_v56 = vmax.f32 %v3277_v6, %v2619_v3  ;;  %v1774_v51 = vmax.f32 %v3279_v7, %v2719_v58 }
 0x15c   :  { %v2391_v37 = vpack.c.bf16 %v1927_v40, %v1927_v40  ;;  %v1819_v38 = vmax.f32 %v1719_v32, %v1769_v2  ;;  %v1153_v41 = vpop.f32.mrf.mxu0  ;;  %v1553_v42 = vpop.f32.mrf.mxu1 }
 0x15d   :  { %v2389_v48 = vpack.c.bf16 %v1925_v50, %v1925_v50  ;;  %v1928_v57 = vmax.f32 %v1878_v59, 0.0  ;;  %v1824_v49 = vmax.f32 %v1724_v56, %v1774_v51  ;;  %v1722_v47 = vmax.f32 %v3257_v60, %v1153_v41 }
 0x15e   :  { %2178 = vst.msk [vmem:[%s3783_s3 + $0x20] sm:$0xf] %vm2169_vm0, %v2391_v37  ;;  %v1876_v46 = vadd.f32 %v3422_v36, %v1819_v38  ;;  %v1772_v6 = vmax.f32 %v3259_v61, %v1553_v42  ;;  %v2620_v25 = vpop.f32.mrf.mxu0  ;;  %v2720_v7 = vpop.f32.mrf.mxu1 }
 0x15f   :  { %2176 = vst.msk [vmem:[%s3783_s3 + $0x18] sm:$0xf] %vm2169_vm0, %v2389_v48  ;;  %v2392_v62 = vpack.c.bf16 %v1928_v57, %v1928_v57  ;;  %v1881_v54 = vadd.f32 %v3422_v36, %v1824_v49  ;;  %v1725_v60 = vmax.f32 %v3285_v10, %v2620_v25  ;;  %v1775_v24 = vmax.f32 %v3287_v11, %v2720_v7 }
 0x160   :  { %v1926_v63 = vmax.f32 %v1876_v46, 0.0  ;;  %v1822_v55 = vmax.f32 %v1722_v47, %v1772_v6  ;;  %v1156_v28 = vpop.f32.mrf.mxu0  ;;  %v1556_v33 = vpop.f32.mrf.mxu1 }
 0x161   :  { %2179 = vst.msk [vmem:[%s3783_s3 + $0x24] sm:$0xf] %vm2169_vm0, %v2392_v62  ;;  %v1931_v61 = vmax.f32 %v1881_v54, 0.0  ;;  %v1825_v44 = vmax.f32 %v1725_v60, %v1775_v24  ;;  %v1723_v52 = vmax.f32 %v3265_v0, %v1156_v28  ;;  %v1773_v45 = vmax.f32 %v3267_v1, %v1556_v33 }
 0x162   :  { %v2390_v53 = vpack.c.bf16 %v1926_v63, %v1926_v63  ;;  %v1879_v10 = vadd.f32 %v3422_v36, %v1822_v55  ;;  %v2623_v35 = vpop.f32.mrf.mxu0  ;;  %v2723_v11 = vpop.f32.mrf.mxu1 }
 0x163   :  { %v2395_v39 = vpack.c.bf16 %v1931_v61, %v1931_v61  ;;  %v1882_v29 = vadd.f32 %v3422_v36, %v1825_v44  ;;  %v1823_v32 = vmax.f32 %v1723_v52, %v1773_v45  ;;  %v1728_v40 = vmax.f32 %v3293_v14, %v2623_v35 }
 0x164   :  { %2177 = vst.msk [vmem:[%s3783_s3 + $0x1c] sm:$0xf] %vm2169_vm0, %v2390_v53  ;;  %v1929_v2 = vmax.f32 %v1879_v10, 0.0  ;;  %v1778_v0 = vmax.f32 %v3295_v15, %v2723_v11  ;;  %v1169_v1 = vpop.f32.mrf.mxu0  ;;  %v1569_v3 = vpop.f32.mrf.mxu1 }
 0x165   :  { %2182 = vst.msk [vmem:[%s3783_s3 + $0x30] sm:$0xf] %vm2169_vm0, %v2395_v39  ;;  %v1932_v58 = vmax.f32 %v1882_v29, 0.0  ;;  %v1880_v50 = vadd.f32 %v3422_v36, %v1823_v32  ;;  %v1726_v14 = vmax.f32 %v3273_v4, %v1169_v1  ;;  %v1776_v59 = vmax.f32 %v3275_v5, %v1569_v3 }
 0x166   :  { %v2393_v56 = vpack.c.bf16 %v1929_v2, %v1929_v2  ;;  %v1828_v51 = vmax.f32 %v1728_v40, %v1778_v0  ;;  %v2624_v37 = vpop.f32.mrf.mxu0  ;;  %v2724_v38 = vpop.f32.mrf.mxu1 }
 0x167   :  { %v2396_v41 = vpack.c.bf16 %v1932_v58, %v1932_v58  ;;  %v1930_v15 = vmax.f32 %v1880_v50, 0.0  ;;  %v1826_v42 = vmax.f32 %v1726_v14, %v1776_v59  ;;  %v1729_v48 = vmax.f32 %v3301_v18, %v2624_v37 }
 0x168   :  { %2180 = vst.msk [vmem:[%s3783_s3 + $0x28] sm:$0xf] %vm2169_vm0, %v2393_v56  ;;  %v1885_v57 = vadd.f32 %v3422_v36, %v1828_v51  ;;  %v1779_v4 = vmax.f32 %v3303_v19, %v2724_v38  ;;  %v1172_v49 = vpop.f32.mrf.mxu0  ;;  %v1572_v5 = vpop.f32.mrf.mxu1 }
 0x169   :  { %2183 = vst.msk [vmem:[%s3783_s3 + $0x34] sm:$0xf] %vm2169_vm0, %v2396_v41  ;;  %v2394_v47 = vpack.c.bf16 %v1930_v15, %v1930_v15  ;;  %v1883_v46 = vadd.f32 %v3422_v36, %v1826_v42  ;;  %v1727_v18 = vmax.f32 %v3281_v8, %v1172_v49  ;;  %v1777_v6 = vmax.f32 %v3283_v9, %v1572_v5 }
 0x16a   :  { %v1935_v25 = vmax.f32 %v1885_v57, 0.0  ;;  %v1829_v7 = vmax.f32 %v1729_v48, %v1779_v4  ;;  %v2627_v62 = vpop.f32.mrf.mxu0  ;;  %v2727_v54 = vpop.f32.mrf.mxu1 }
 0x16b   :  { %2181 = vst.msk [vmem:[%s3783_s3 + $0x2c] sm:$0xf] %vm2169_vm0, %v2394_v47  ;;  %v1933_v19 = vmax.f32 %v1883_v46, 0.0  ;;  %v1827_v60 = vmax.f32 %v1727_v18, %v1777_v6  ;;  %v1732_v24 = vmax.f32 %v3309_v22, %v2627_v62  ;;  %v1782_v63 = vmax.f32 %v3311_v23, %v2727_v54  ;;  %v3835_v62 = vld [vmem:[#allocation2_spill] sm:$0xff]  ;;  %v3836_v54 = vld [vmem:[#allocation3_spill] sm:$0xff] }
 0x16c   :  { %v2399_v55 = vpack.c.bf16 %v1935_v25, %v1935_v25  ;;  %v1886_v8 = vadd.f32 %v3422_v36, %v1829_v7  ;;  %v1185_v28 = vpop.f32.mrf.mxu0  ;;  %v1585_v9 = vpop.f32.mrf.mxu1 }
 0x16d   :  { %v2397_v33 = vpack.c.bf16 %v1933_v19, %v1933_v19  ;;  %v1884_v61 = vadd.f32 %v3422_v36, %v1827_v60  ;;  %v1832_v44 = vmax.f32 %v1732_v24, %v1782_v63  ;;  %v1730_v52 = vmax.f32 %v3289_v12, %v1185_v28 }
 0x16e   :  { %2186 = vst.msk [vmem:[%s3783_s3 + $0x40] sm:$0xf] %vm2169_vm0, %v2399_v55  ;;  %v1936_v45 = vmax.f32 %v1886_v8, 0.0  ;;  %v1780_v22 = vmax.f32 %v3291_v13, %v1585_v9  ;;  %v2628_v23 = vpop.f32.mrf.mxu0  ;;  %v2728_v53 = vpop.f32.mrf.mxu1 }
 0x16f   :  { %2184 = vst.msk [vmem:[%s3783_s3 + $0x38] sm:$0xf] %vm2169_vm0, %v2397_v33  ;;  %v1934_v10 = vmax.f32 %v1884_v61, 0.0  ;;  %v1889_v35 = vadd.f32 %v3422_v36, %v1832_v44  ;;  %v1733_v12 = vmax.f32 %v3317_v26, %v2628_v23  ;;  %v1783_v11 = vmax.f32 %v3319_v27, %v2728_v53  ;;  %v3837_v33 = vld [vmem:[#allocation11_spill] sm:$0xff] }
 0x170   :  { %v2400_v39 = vpack.c.bf16 %v1936_v45, %v1936_v45  ;;  %v1830_v29 = vmax.f32 %v1730_v52, %v1780_v22  ;;  %v1188_v32 = vpop.f32.mrf.mxu0  ;;  %v1588_v40 = vpop.f32.mrf.mxu1  ;;  %v3838_v52 = vld [vmem:[#allocation12_spill] sm:$0xff] }
 0x171   :  { %v2398_v2 = vpack.c.bf16 %v1934_v10, %v1934_v10  ;;  %v1939_v13 = vmax.f32 %v1889_v35, 0.0  ;;  %v1833_v0 = vmax.f32 %v1733_v12, %v1783_v11  ;;  %v1731_v1 = vmax.f32 %v3297_v16, %v1188_v32  ;;  %v3839_v35 = vld [vmem:[#allocation4_spill] sm:$0xff]  ;;  %v3840_v11 = vld [vmem:[#allocation5_spill] sm:$0xff] }
 0x172   :  { %2187 = vst.msk [vmem:[%s3783_s3 + $0x44] sm:$0xf] %vm2169_vm0, %v2400_v39  ;;  %v1887_v3 = vadd.f32 %v3422_v36, %v1830_v29  ;;  %v1781_v26 = vmax.f32 %v3299_v17, %v1588_v40  ;;  %v2631_v58 = vpop.f32.mrf.mxu0  ;;  %v2731_v27 = vpop.f32.mrf.mxu1 }
 0x173   :  { %2185 = vst.msk [vmem:[%s3783_s3 + $0x3c] sm:$0xf] %vm2169_vm0, %v2398_v2  ;;  %v2403_v50 = vpack.c.bf16 %v1939_v13, %v1939_v13  ;;  %v1890_v14 = vadd.f32 %v3422_v36, %v1833_v0  ;;  %v1736_v16 = vmax.f32 %v3325_v30, %v2631_v58  ;;  %v1786_v59 = vmax.f32 %v3327_v31, %v2731_v27 }
 0x174   :  { %v1937_v56 = vmax.f32 %v1887_v3, 0.0  ;;  %v1831_v51 = vmax.f32 %v1731_v1, %v1781_v26  ;;  %v1201_v37 = vpop.f32.mrf.mxu0  ;;  %v1601_v38 = vpop.f32.mrf.mxu1  ;;  %v3841_v1 = vld [vmem:[#allocation15_spill] sm:$0xff]  ;;  %v3842_v26 = vld [vmem:[#allocation16_spill] sm:$0xff] }
 0x175   :  { %2190 = vst.msk [vmem:[%s3783_s3 + $0x50] sm:$0xf] %vm2169_vm0, %v2403_v50  ;;  %v1940_v17 = vmax.f32 %v1890_v14, 0.0  ;;  %v1836_v41 = vmax.f32 %v1736_v16, %v1786_v59  ;;  %v1734_v15 = vmax.f32 %v3305_v20, %v1201_v37  ;;  %v1784_v42 = vmax.f32 %v3307_v21, %v1601_v38  ;;  %v3834_v20 = vld [vmem:[#allocation8_spill] sm:$0xff]  ;;  %v3843_v37 = vld [vmem:[#allocation6_spill] sm:$0xff] }
 0x176   :  { %v2401_v48 = vpack.c.bf16 %v1937_v56, %v1937_v56  ;;  %v1888_v30 = vadd.f32 %v3422_v36, %v1831_v51  ;;  %v2632_v57 = vpop.f32.mrf.mxu0  ;;  %v2732_v31 = vpop.f32.mrf.mxu1 }
 0x177   :  { %v2404_v4 = vpack.c.bf16 %v1940_v17, %v1940_v17  ;;  %v1893_v49 = vadd.f32 %v3422_v36, %v1836_v41  ;;  %v1834_v5 = vmax.f32 %v1734_v15, %v1784_v42  ;;  %v1737_v47 = vmax.f32 %v3333_v34, %v2632_v57  ;;  %v3844_v41 = vld [vmem:[#allocation7_spill] sm:$0xff] }
 0x178   :  { %2188 = vst.msk [vmem:[%s3783_s3 + $0x48] sm:$0xf] %vm2169_vm0, %v2401_v48  ;;  %v1938_v46 = vmax.f32 %v1888_v30, 0.0  ;;  %v1787_v18 = vmax.f32 %v3834_v20, %v2732_v31  ;;  %v1204_v21 = vpop.f32.mrf.mxu0  ;;  %v1604_v6 = vpop.f32.mrf.mxu1  ;;  %v3845_v31 = vld [vmem:[#allocation19_spill] sm:$0xff] }
 0x179   :  { %2191 = vst.msk [vmem:[%s3783_s3 + $0x54] sm:$0xf] %vm2169_vm0, %v2404_v4  ;;  %v1943_v25 = vmax.f32 %v1893_v49, 0.0  ;;  %v1891_v7 = vadd.f32 %v3422_v36, %v1834_v5  ;;  %v1735_v34 = vmax.f32 %v3835_v62, %v1204_v21  ;;  %v1785_v19 = vmax.f32 %v3836_v54, %v1604_v6  ;;  %v3846_v49 = vld [vmem:[#allocation20_spill] sm:$0xff]  ;;  %v3848_v54 = vld [vmem:[#allocation10_spill] sm:$0xff] }
 0x17a   :  { %v2402_v60 = vpack.c.bf16 %v1938_v46, %v1938_v46  ;;  %v1837_v24 = vmax.f32 %v1737_v47, %v1787_v18  ;;  %v2635_v63 = vpop.f32.mrf.mxu0  ;;  %v2735_v55 = vpop.f32.mrf.mxu1 }
 0x17b   :  { %v2407_v8 = vpack.c.bf16 %v1943_v25, %v1943_v25  ;;  %v1941_v28 = vmax.f32 %v1891_v7, 0.0  ;;  %v1835_v9 = vmax.f32 %v1735_v34, %v1785_v19  ;;  %v1740_v61 = vmax.f32 %v3837_v33, %v2635_v63  ;;  %v3847_v7 = vld [vmem:[#allocation9_spill] sm:$0xff] }
 0x17c   :  { %2189 = vst.msk [vmem:[%s3783_s3 + $0x4c] sm:$0xf] %vm2169_vm0, %v2402_v60  ;;  %v1894_v44 = vadd.f32 %v3422_v36, %v1837_v24  ;;  %v1790_v45 = vmax.f32 %v3838_v52, %v2735_v55  ;;  %v1217_v22 = vpop.f32.mrf.mxu0  ;;  %v1617_v23 = vpop.f32.mrf.mxu1 }
 0x17d   :  { %2194 = vst.msk [vmem:[%s3783_s3 + $0x60] sm:$0xf] %vm2169_vm0, %v2407_v8  ;;  %v2405_v53 = vpack.c.bf16 %v1941_v28, %v1941_v28  ;;  %v1892_v10 = vadd.f32 %v3422_v36, %v1835_v9  ;;  %v1738_v12 = vmax.f32 %v3839_v35, %v1217_v22  ;;  %v1788_v39 = vmax.f32 %v3840_v11, %v1617_v23  ;;  %v3849_v8 = vld [vmem:[#allocation23_spill] sm:$0xff]  ;;  %v3850_v9 = vld [vmem:[#allocation24_spill] sm:$0xff]  ;;  %v3852_v35 = vld [vmem:[#allocation14_spill] sm:$0xff] }
 0x17e   :  { %v1944_v29 = vmax.f32 %v1894_v44, 0.0  ;;  %v1840_v32 = vmax.f32 %v1740_v61, %v1790_v45  ;;  %v2636_v40 = vpop.f32.mrf.mxu0  ;;  %v2736_v2 = vpop.f32.mrf.mxu1 }
 0x17f   :  { %2192 = vst.msk [vmem:[%s3783_s3 + $0x58] sm:$0xf] %vm2169_vm0, %v2405_v53  ;;  %v1942_v13 = vmax.f32 %v1892_v10, 0.0  ;;  %v1838_v0 = vmax.f32 %v1738_v12, %v1788_v39  ;;  %v1741_v3 = vmax.f32 %v3841_v1, %v2636_v40  ;;  %v1791_v58 = vmax.f32 %v3842_v26, %v2736_v2  ;;  %v3851_v53 = vld [vmem:[#allocation13_spill] sm:$0xff]  ;;  %v3854_v26 = vld [vmem:[#allocation28_spill] sm:$0xff] }
 0x180   :  { %v2408_v27 = vpack.c.bf16 %v1944_v29, %v1944_v29  ;;  %v1897_v50 = vadd.f32 %v3422_v36, %v1840_v32  ;;  %v1220_v14 = vpop.f32.mrf.mxu0  ;;  %v1620_v16 = vpop.f32.mrf.mxu1 }
 0x181   :  { %v2406_v59 = vpack.c.bf16 %v1942_v13, %v1942_v13  ;;  %v1895_v56 = vadd.f32 %v3422_v36, %v1838_v0  ;;  %v1841_v51 = vmax.f32 %v1741_v3, %v1791_v58  ;;  %v1739_v38 = vmax.f32 %v3843_v37, %v1220_v14  ;;  %v3853_v0 = vld [vmem:[#allocation27_spill] sm:$0xff] }
 0x182   :  { %2195 = vst.msk [vmem:[%s3783_s3 + $0x64] sm:$0xf] %vm2169_vm0, %v2408_v27  ;;  %v1947_v17 = vmax.f32 %v1897_v50, 0.0  ;;  %v1789_v15 = vmax.f32 %v3844_v41, %v1620_v16  ;;  %v2639_v42 = vpop.f32.mrf.mxu0  ;;  %v2739_v48 = vpop.f32.mrf.mxu1 }
 0x183   :  { %2193 = vst.msk [vmem:[%s3783_s3 + $0x5c] sm:$0xf] %vm2169_vm0, %v2406_v59  ;;  %v1945_v30 = vmax.f32 %v1895_v56, 0.0  ;;  %v1898_v57 = vadd.f32 %v3422_v36, %v1841_v51  ;;  %v1744_v4 = vmax.f32 %v3845_v31, %v2639_v42  ;;  %v1794_v5 = vmax.f32 %v3846_v49, %v2739_v48  ;;  %v3855_v59 = vld [vmem:[#allocation17_spill] sm:$0xff]  ;;  %v3856_v51 = vld [vmem:[#allocation18_spill] sm:$0xff]  ;;  %v3858_v49 = vld [vmem:[#allocation32_spill] sm:$0xff] }
 0x184   :  { %v2411_v47 = vpack.c.bf16 %v1947_v17, %v1947_v17  ;;  %v1839_v46 = vmax.f32 %v1739_v38, %v1789_v15  ;;  %v1233_v20 = vpop.f32.mrf.mxu0  ;;  %v1633_v18 = vpop.f32.mrf.mxu1 }
 0x185   :  { %v2409_v21 = vpack.c.bf16 %v1945_v30, %v1945_v30  ;;  %v1948_v6 = vmax.f32 %v1898_v57, 0.0  ;;  %v1844_v25 = vmax.f32 %v1744_v4, %v1794_v5  ;;  %v1742_v62 = vmax.f32 %v3847_v7, %v1233_v20  ;;  %v3857_v57 = vld [vmem:[#allocation31_spill] sm:$0xff] }
 0x186   :  { %2198 = vst.msk [vmem:[%s3783_s3 + $0x70] sm:$0xf] %vm2169_vm0, %v2411_v47  ;;  %v1896_v34 = vadd.f32 %v3422_v36, %v1839_v46  ;;  %v1792_v19 = vmax.f32 %v3848_v54, %v1633_v18  ;;  %v2640_v60 = vpop.f32.mrf.mxu0  ;;  %v2740_v24 = vpop.f32.mrf.mxu1 }
 0x187   :  { %2196 = vst.msk [vmem:[%s3783_s3 + $0x68] sm:$0xf] %vm2169_vm0, %v2409_v21  ;;  %v2412_v63 = vpack.c.bf16 %v1948_v6, %v1948_v6  ;;  %v1901_v55 = vadd.f32 %v3422_v36, %v1844_v25  ;;  %v1745_v28 = vmax.f32 %v3849_v8, %v2640_v60  ;;  %v1795_v33 = vmax.f32 %v3850_v9, %v2740_v24  ;;  %v3859_v21 = vld [vmem:[#allocation21_spill] sm:$0xff]  ;;  %v3860_v25 = vld [vmem:[#allocation22_spill] sm:$0xff]  ;;  %v3862_v8 = vld [vmem:[#allocation36_spill] sm:$0xff] }
 0x188   :  { %v1946_v61 = vmax.f32 %v1896_v34, 0.0  ;;  %v1842_v44 = vmax.f32 %v1742_v62, %v1792_v19  ;;  %v1236_v52 = vpop.f32.mrf.mxu0  ;;  %v1636_v45 = vpop.f32.mrf.mxu1 }
 0x189   :  { %2199 = vst.msk [vmem:[%s3783_s3 + $0x74] sm:$0xf] %vm2169_vm0, %v2412_v63  ;;  %v1951_v22 = vmax.f32 %v1901_v55, 0.0  ;;  %v1845_v23 = vmax.f32 %v1745_v28, %v1795_v33  ;;  %v1743_v10 = vmax.f32 %v3851_v53, %v1236_v52  ;;  %v1793_v12 = vmax.f32 %v3852_v35, %v1636_v45  ;;  %v3861_v63 = vld [vmem:[#allocation35_spill] sm:$0xff]  ;;  %v3864_v35 = vld [vmem:[#allocation26_spill] sm:$0xff] }
 0x18a   :  { %v2410_v11 = vpack.c.bf16 %v1946_v61, %v1946_v61  ;;  %v1899_v39 = vadd.f32 %v3422_v36, %v1842_v44  ;;  %v2643_v29 = vpop.f32.mrf.mxu0  ;;  %v2743_v32 = vpop.f32.mrf.mxu1 }
 0x18b   :  { %v2415_v40 = vpack.c.bf16 %v1951_v22, %v1951_v22  ;;  %v1902_v2 = vadd.f32 %v3422_v36, %v1845_v23  ;;  %v1843_v13 = vmax.f32 %v1743_v10, %v1793_v12  ;;  %v1748_v1 = vmax.f32 %v3853_v0, %v2643_v29  ;;  %v3863_v23 = vld [vmem:[#allocation25_spill] sm:$0xff] }
 0x18c   :  { %2197 = vst.msk [vmem:[%s3783_s3 + $0x6c] sm:$0xf] %vm2169_vm0, %v2410_v11  ;;  %v1949_v3 = vmax.f32 %v1899_v39, 0.0  ;;  %v1798_v58 = vmax.f32 %v3854_v26, %v2743_v32  ;;  %v1249_v27 = vpop.f32.mrf.mxu0  ;;  %v1649_v50 = vpop.f32.mrf.mxu1 }
 0x18d   :  { %2202 = vst.msk [vmem:[%s3783_s3 + $0x80] sm:$0xf] %vm2169_vm0, %v2415_v40  ;;  %v1952_v14 = vmax.f32 %v1902_v2, 0.0  ;;  %v1900_v16 = vadd.f32 %v3422_v36, %v1843_v13  ;;  %v1746_v56 = vmax.f32 %v3855_v59, %v1249_v27  ;;  %v1796_v37 = vmax.f32 %v3856_v51, %v1649_v50  ;;  %v3865_v40 = vld [vmem:[#allocation39_spill] sm:$0xff]  ;;  %v3866_v13 = vld [vmem:[#allocation40_spill] sm:$0xff]  ;;  %v3868_v51 = vld [vmem:[#allocation30_spill] sm:$0xff] }
 0x18e   :  { %v2413_v38 = vpack.c.bf16 %v1949_v3, %v1949_v3  ;;  %v1848_v17 = vmax.f32 %v1748_v1, %v1798_v58  ;;  %v2644_v41 = vpop.f32.mrf.mxu0  ;;  %v2744_v15 = vpop.f32.mrf.mxu1 }
 0x18f   :  { %v2416_v42 = vpack.c.bf16 %v1952_v14, %v1952_v14  ;;  %v1950_v48 = vmax.f32 %v1900_v16, 0.0  ;;  %v1846_v30 = vmax.f32 %v1746_v56, %v1796_v37  ;;  %v1749_v31 = vmax.f32 %v3857_v57, %v2644_v41  ;;  %v3867_v16 = vld [vmem:[#allocation29_spill] sm:$0xff] }
 0x190   :  { %2200 = vst.msk [vmem:[%s3783_s3 + $0x78] sm:$0xf] %vm2169_vm0, %v2413_v38  ;;  %v1905_v4 = vadd.f32 %v3422_v36, %v1848_v17  ;;  %v1799_v5 = vmax.f32 %v3858_v49, %v2744_v15  ;;  %v1252_v47 = vpop.f32.mrf.mxu0  ;;  %v1652_v46 = vpop.f32.mrf.mxu1 }
 0x191   :  { %2203 = vst.msk [vmem:[%s3783_s3 + $0x84] sm:$0xf] %vm2169_vm0, %v2416_v42  ;;  %v2414_v20 = vpack.c.bf16 %v1950_v48, %v1950_v48  ;;  %v1903_v18 = vadd.f32 %v3422_v36, %v1846_v30  ;;  %v1747_v6 = vmax.f32 %v3859_v21, %v1252_v47  ;;  %v1797_v7 = vmax.f32 %v3860_v25, %v1652_v46  ;;  %v3869_v42 = vld [vmem:[#allocation43_spill] sm:$0xff]  ;;  %v3870_v30 = vld [vmem:[#allocation44_spill] sm:$0xff]  ;;  %v3872_v21 = vld [vmem:[#allocation34_spill] sm:$0xff] }
 0x192   :  { %v1955_v62 = vmax.f32 %v1905_v4, 0.0  ;;  %v1849_v34 = vmax.f32 %v1749_v31, %v1799_v5  ;;  %v2647_v54 = vpop.f32.mrf.mxu0  ;;  %v2747_v19 = vpop.f32.mrf.mxu1 }
 0x193   :  { %2201 = vst.msk [vmem:[%s3783_s3 + $0x7c] sm:$0xf] %vm2169_vm0, %v2414_v20  ;;  %v1953_v60 = vmax.f32 %v1903_v18, 0.0  ;;  %v1847_v24 = vmax.f32 %v1747_v6, %v1797_v7  ;;  %v1752_v55 = vmax.f32 %v3861_v63, %v2647_v54  ;;  %v1802_v28 = vmax.f32 %v3862_v8, %v2747_v19  ;;  %v3871_v20 = vld [vmem:[#allocation33_spill] sm:$0xff]  ;;  %v3874_v8 = vld [vmem:[#allocation48_spill] sm:$0xff] }
 0x194   :  { %v2419_v9 = vpack.c.bf16 %v1955_v62, %v1955_v62  ;;  %v1906_v33 = vadd.f32 %v3422_v36, %v1849_v34  ;;  %v1265_v61 = vpop.f32.mrf.mxu0  ;;  %v1665_v44 = vpop.f32.mrf.mxu1 }
 0x195   :  { %v2417_v52 = vpack.c.bf16 %v1953_v60, %v1953_v60  ;;  %v1904_v45 = vadd.f32 %v3422_v36, %v1847_v24  ;;  %v1852_v22 = vmax.f32 %v1752_v55, %v1802_v28  ;;  %v1750_v53 = vmax.f32 %v3863_v23, %v1265_v61  ;;  %v3873_v24 = vld [vmem:[#allocation47_spill] sm:$0xff] }
 0x196   :  { %2206 = vst.msk [vmem:[%s3783_s3 + $0x90] sm:$0xf] %vm2169_vm0, %v2419_v9  ;;  %v1956_v10 = vmax.f32 %v1906_v33, 0.0  ;;  %v1800_v12 = vmax.f32 %v3864_v35, %v1665_v44  ;;  %v2648_v11 = vpop.f32.mrf.mxu0  ;;  %v2748_v39 = vpop.f32.mrf.mxu1 }
 0x197   :  { %2204 = vst.msk [vmem:[%s3783_s3 + $0x88] sm:$0xf] %vm2169_vm0, %v2417_v52  ;;  %v1954_v29 = vmax.f32 %v1904_v45, 0.0  ;;  %v1909_v32 = vadd.f32 %v3422_v36, %v1852_v22  ;;  %v1753_v2 = vmax.f32 %v3865_v40, %v2648_v11  ;;  %v1803_v0 = vmax.f32 %v3866_v13, %v2748_v39  ;;  %v3875_v52 = vld [vmem:[#allocation37_spill] sm:$0xff]  ;;  %v3876_v22 = vld [vmem:[#allocation38_spill] sm:$0xff] }
 0x198   :  { %v2420_v1 = vpack.c.bf16 %v1956_v10, %v1956_v10  ;;  %v1850_v3 = vmax.f32 %v1750_v53, %v1800_v12  ;;  %v1268_v26 = vpop.f32.mrf.mxu0  ;;  %v1668_v58 = vpop.f32.mrf.mxu1  ;;  %v3878_v13 = vld [vmem:[#allocation50_spill] sm:$0xff] }
 0x199   :  { %v2418_v27 = vpack.c.bf16 %v1954_v29, %v1954_v29  ;;  %v1959_v50 = vmax.f32 %v1909_v32, 0.0  ;;  %v1853_v14 = vmax.f32 %v1753_v2, %v1803_v0  ;;  %v1751_v59 = vmax.f32 %v3867_v16, %v1268_v26  ;;  %v3877_v32 = vld [vmem:[#allocation49_spill] sm:$0xff] }
 0x19a   :  { %2207 = vst.msk [vmem:[%s3783_s3 + $0x94] sm:$0xf] %vm2169_vm0, %v2420_v1  ;;  %v1907_v56 = vadd.f32 %v3422_v36, %v1850_v3  ;;  %v1801_v37 = vmax.f32 %v3868_v51, %v1668_v58  ;;  %v2651_v38 = vpop.f32.mrf.mxu0  ;;  %v2751_v17 = vpop.f32.mrf.mxu1 }
 0x19b   :  { %2205 = vst.msk [vmem:[%s3783_s3 + $0x8c] sm:$0xf] %vm2169_vm0, %v2418_v27  ;;  %v2423_v41 = vpack.c.bf16 %v1959_v50, %v1959_v50  ;;  %v1910_v15 = vadd.f32 %v3422_v36, %v1853_v14  ;;  %v1756_v48 = vmax.f32 %v3869_v42, %v2651_v38  ;;  %v1806_v57 = vmax.f32 %v3870_v30, %v2751_v17  ;;  %v3879_v27 = vld [vmem:[#allocation41_spill] sm:$0xff]  ;;  %v3880_v14 = vld [vmem:[#allocation42_spill] sm:$0xff] }
 0x19c   :  { %v1957_v31 = vmax.f32 %v1907_v56, 0.0  ;;  %v1851_v4 = vmax.f32 %v1751_v59, %v1801_v37  ;;  %v1281_v49 = vpop.f32.mrf.mxu0  ;;  %v1681_v5 = vpop.f32.mrf.mxu1 }
 0x19d   :  { %2210 = vst.msk [vmem:[%s3783_s3 + $0xa0] sm:$0xf] %vm2169_vm0, %v2423_v41  ;;  %v1960_v47 = vmax.f32 %v1910_v15, 0.0  ;;  %v1856_v46 = vmax.f32 %v1756_v48, %v1806_v57  ;;  %v1754_v18 = vmax.f32 %v3871_v20, %v1281_v49  ;;  %v1804_v6 = vmax.f32 %v3872_v21, %v1681_v5  ;;  %v3881_v15 = vld [vmem:[#allocation51_spill] sm:$0xff] }
 0x19e   :  { %v2421_v25 = vpack.c.bf16 %v1957_v31, %v1957_v31  ;;  %v1908_v7 = vadd.f32 %v3422_v36, %v1851_v4  ;;  %v2652_v62 = vpop.f32.mrf.mxu0  ;;  %v2752_v34 = vpop.f32.mrf.mxu1 }
 0x19f   :  { %v2424_v54 = vpack.c.bf16 %v1960_v47, %v1960_v47  ;;  %v1913_v19 = vadd.f32 %v3422_v36, %v1856_v46  ;;  %v1854_v60 = vmax.f32 %v1754_v18, %v1804_v6  ;;  %v1757_v63 = vmax.f32 %v3873_v24, %v2652_v62  ;;  %v3882_v47 = vld [vmem:[#allocation45_spill] sm:$0xff] }
 0x1a0   :  { %2208 = vst.msk [vmem:[%s3783_s3 + $0x98] sm:$0xf] %vm2169_vm0, %v2421_v25  ;;  %v1958_v55 = vmax.f32 %v1908_v7, 0.0  ;;  %v1807_v28 = vmax.f32 %v3874_v8, %v2752_v34  ;;  %v1284_v9 = vpop.f32.mrf.mxu0  ;;  %v1684_v33 = vpop.f32.mrf.mxu1 }
 0x1a1   :  { %2211 = vst.msk [vmem:[%s3783_s3 + $0xa4] sm:$0xf] %vm2169_vm0, %v2424_v54  ;;  %v1963_v61 = vmax.f32 %v1913_v19, 0.0  ;;  %v1911_v44 = vadd.f32 %v3422_v36, %v1854_v60  ;;  %v1755_v45 = vmax.f32 %v3875_v52, %v1284_v9  ;;  %v1805_v23 = vmax.f32 %v3876_v22, %v1684_v33 }
 0x1a2   :  { %v2422_v53 = vpack.c.bf16 %v1958_v55, %v1958_v55  ;;  %v1857_v10 = vmax.f32 %v1757_v63, %v1807_v28  ;;  %v2655_v35 = vpop.f32.mrf.mxu0  ;;  %v2755_v12 = vpop.f32.mrf.mxu1 }
 0x1a3   :  { %v2427_v11 = vpack.c.bf16 %v1963_v61, %v1963_v61  ;;  %v1961_v39 = vmax.f32 %v1911_v44, 0.0  ;;  %v1855_v29 = vmax.f32 %v1755_v45, %v1805_v23  ;;  %v1760_v40 = vmax.f32 %v3877_v32, %v2655_v35 }
 0x1a4   :  { %2209 = vst.msk [vmem:[%s3783_s3 + $0x9c] sm:$0xf] %vm2169_vm0, %v2422_v53  ;;  %v1914_v2 = vadd.f32 %v3422_v36, %v1857_v10  ;;  %v1810_v0 = vmax.f32 %v3878_v13, %v2755_v12  ;;  %v1297_v1 = vpop.f32.mrf.mxu0  ;;  %v1697_v3 = vpop.f32.mrf.mxu1 }
 0x1a5   :  { %2214 = vst.msk [vmem:[%s3783_s3 + $0xb0] sm:$0xf] %vm2169_vm0, %v2427_v11  ;;  %v2425_v26 = vpack.c.bf16 %v1961_v39, %v1961_v39  ;;  %v1912_v58 = vadd.f32 %v3422_v36, %v1855_v29  ;;  %v1758_v50 = vmax.f32 %v3879_v27, %v1297_v1  ;;  %v1808_v16 = vmax.f32 %v3880_v14, %v1697_v3 }
 0x1a6   :  { %v1964_v59 = vmax.f32 %v1914_v2, 0.0  ;;  %v1860_v56 = vmax.f32 %v1760_v40, %v1810_v0  ;;  %v2656_v51 = vpop.f32.mrf.mxu0  ;;  %v2756_v37 = vpop.f32.mrf.mxu1 }
 0x1a7   :  { %2212 = vst.msk [vmem:[%s3783_s3 + $0xa8] sm:$0xf] %vm2169_vm0, %v2425_v26  ;;  %v1962_v38 = vmax.f32 %v1912_v58, 0.0  ;;  %v1858_v17 = vmax.f32 %v1758_v50, %v1808_v16  ;;  %v1761_v41 = vmax.f32 %v3431_v43, %v2656_v51  ;;  %v1811_v42 = vmax.f32 %v3881_v15, %v2756_v37  ;;  %v3883_v43 = vld [vmem:[#allocation46_spill] sm:$0xff] }
 0x1a8   :  { %v2428_v48 = vpack.c.bf16 %v1964_v59, %v1964_v59  ;;  %v1917_v30 = vadd.f32 %v3422_v36, %v1860_v56  ;;  %v1300_v57 = vpop.f32.mrf.mxu0  ;;  %v1700_v31 = vpop.f32.mrf.mxu1 }
 0x1a9   :  { %v2426_v4 = vpack.c.bf16 %v1962_v38, %v1962_v38  ;;  %v1915_v49 = vadd.f32 %v3422_v36, %v1858_v17  ;;  %v1861_v5 = vmax.f32 %v1761_v41, %v1811_v42  ;;  %v1759_v46 = vmax.f32 %v3882_v47, %v1300_v57 }
 0x1aa   :  { %2215 = vst.msk [vmem:[%s3783_s3 + $0xb4] sm:$0xf] %vm2169_vm0, %v2428_v48  ;;  %v1967_v20 = vmax.f32 %v1917_v30, 0.0  ;;  %v1809_v18 = vmax.f32 %v3883_v43, %v1700_v31 }
 0x1ab   :  { %2213 = vst.msk [vmem:[%s3783_s3 + $0xac] sm:$0xf] %vm2169_vm0, %v2426_v4  ;;  %v1965_v21 = vmax.f32 %v1915_v49, 0.0  ;;  %v1918_v6 = vadd.f32 %v3422_v36, %v1861_v5 }
 0x1ac   :  { %v2431_v25 = vpack.c.bf16 %v1967_v20, %v1967_v20  ;;  %v1859_v7 = vmax.f32 %v1759_v46, %v1809_v18 }
 0x1ad   :  { %v2429_v62 = vpack.c.bf16 %v1965_v21, %v1965_v21  ;;  %v1968_v34 = vmax.f32 %v1918_v6, 0.0 }
 0x1ae   :  { %2218 = vst.msk [vmem:[%s3783_s3 + $0xc0] sm:$0xf] %vm2169_vm0, %v2431_v25  ;;  %v1916_v54 = vadd.f32 %v3422_v36, %v1859_v7 }
 0x1af   :  { %2216 = vst.msk [vmem:[%s3783_s3 + $0xb8] sm:$0xf] %vm2169_vm0, %v2429_v62  ;;  %v2432_v19 = vpack.c.bf16 %v1968_v34, %v1968_v34 }
 0x1b0   :  { %v1966_v60 = vmax.f32 %v1916_v54, 0.0 }
 0x1b1   :  { %2219 = vst.msk [vmem:[%s3783_s3 + $0xc4] sm:$0xf] %vm2169_vm0, %v2432_v19 }
 0x1b2   :  { %v2430_v24 = vpack.c.bf16 %v1966_v60, %v1966_v60 }
 0x1b4   :  { %2217 = vst.msk [vmem:[%s3783_s3 + $0xbc] sm:$0xf] %vm2169_vm0, %v2430_v24 }

// kernel: cnn_forward.4
= control target key start
LH: loop header
LB: loop body
LE: loop exit
PB: predicated region body
PF: predicated region fallthrough
CT: control target
= control target key end

     0   :  { %vm575_vm0 = vcmask 125952   ;;  %s1102_s1 = inlined_call_operand.vmem [shape: bf16[256,16], index: 1, kind: input, shape index: {}]   ;;  %s1103_s0 = inlined_call_operand.vmem [shape: bf16[4,64,256], index: 0, kind: input, shape index: {}]   ;;  %s1104_s2 = inlined_call_operand.vmem [shape: f32[1,16], index: 2, kind: input, shape index: {}]   ;;  %s1105_s3 = inlined_call_operand.vmem [shape: bf16[64,16], index: 3, kind: output, shape index: {}]  }
   0x1   :  { %v781_v0 = vld [vmem:[%s1102_s1 + $0x78] sm:$0xff]   ;;  %v783_v2 = vld [vmem:[%s1102_s1 + $0x70] sm:$0xff]   ;;  %v785_v4 = vld [vmem:[%s1102_s1 + $0x68] sm:$0xff]  }
   0x2   :  { %v782_v1 = vld [vmem:[%s1102_s1 + $0x38] sm:$0xff]   ;;  %653 = vmatprep.subr.bf16.mxu0 %v781_v0  ;;  %765 = vmatprep.subr.bf16.mxu1 %v781_v0  ;;  %v784_v3 = vld [vmem:[%s1102_s1 + $0x30] sm:$0xff]   ;;  %v786_v5 = vld [vmem:[%s1102_s1 + $0x28] sm:$0xff]  }
   0x3   :  { %654 = vmatpush3.bf16.msra.mxu0 %v782_v1  ;;  %773 = vmatpush3.bf16.msra.mxu1 %v782_v1  ;;  %v787_v6 = vld [vmem:[%s1102_s1 + $0x60] sm:$0xff]   ;;  %v789_v8 = vld [vmem:[%s1102_s1 + $0x58] sm:$0xff]   ;;  %v791_v10 = vld [vmem:[%s1102_s1 + $0x50] sm:$0xff]  }
   0x4   :  { %655 = vmatprep.subr.bf16.mxu0 %v783_v2  ;;  %766 = vmatprep.subr.bf16.mxu1 %v783_v2  ;;  %v788_v7 = vld [vmem:[%s1102_s1 + $0x20] sm:$0xff]   ;;  %v790_v9 = vld [vmem:[%s1102_s1 + $0x18] sm:$0xff]   ;;  %v792_v13 = vld [vmem:[%s1102_s1 + $0x10] sm:$0xff]  }
   0x5   :  { %v799_v11 = vld [vmem:[%s1103_s0 + $0x4] ss:$8 sps:$4 sm:$0xff]   ;;  %v797_v18 = vld [vmem:[%s1103_s0] ss:$8 sps:$4 sm:$0xff]   ;;  %v803_v20 = vld [vmem:[%s1103_s0 + $0x14] ss:$8 sps:$4 sm:$0xff]  }
   0x6   :  { %v802_v12 = vld [vmem:[%s1103_s0 + $0x84] ss:$8 sps:$4 sm:$0xff]   ;;  %367 = vmatprep.mubr.bf16.mxu0 %v799_v11  ;;  %v800_v19 = vld [vmem:[%s1103_s0 + $0x80] ss:$8 sps:$4 sm:$0xff]   ;;  %v805_v21 = vld [vmem:[%s1103_s0 + $0x94] ss:$8 sps:$4 sm:$0xff]  }
   0x7   :  { %656 = vmatpush3.bf16.msra.mxu0 %v784_v3  ;;  %774 = vmatpush3.bf16.msra.mxu1 %v784_v3  ;;  %v793_v14 = vld [vmem:[%s1102_s1 + $0x48] sm:$0xff]   ;;  %v795_v16 = vld [vmem:[%s1102_s1 + $0x40] sm:$0xff]   ;;  %v807_v22 = vld [vmem:[%s1103_s0 + $0x10] ss:$8 sps:$4 sm:$0xff]  }
   0x8   :  { %657 = vmatprep.subr.bf16.mxu0 %v785_v4  ;;  %767 = vmatprep.subr.bf16.mxu1 %v785_v4  ;;  %v794_v15 = vld [vmem:[%s1102_s1 + $0x8] sm:$0xff]   ;;  %v796_v17 = vld [vmem:[%s1102_s1] sm:$0xff]   ;;  %v808_v23 = vld [vmem:[%s1103_s0 + $0x90] ss:$8 sps:$4 sm:$0xff]  }
   0x9   :  { %431 = vmatprep.mubr.bf16.mxu1 %v802_v12  ;;  %v809_v24 = vld [vmem:[%s1103_s0 + $0x24] ss:$8 sps:$4 sm:$0xff]   ;;  %v813_v26 = vld [vmem:[%s1103_s0 + $0x20] ss:$8 sps:$4 sm:$0xff]   ;;  %v815_v28 = vld [vmem:[%s1103_s0 + $0x34] ss:$8 sps:$4 sm:$0xff]  }
   0xa   :  { %v811_v25 = vld [vmem:[%s1103_s0 + $0xa4] ss:$8 sps:$4 sm:$0xff]   ;;  %v814_v27 = vld [vmem:[%s1103_s0 + $0xa0] ss:$8 sps:$4 sm:$0xff]   ;;  %v817_v29 = vld [vmem:[%s1103_s0 + $0xb4] ss:$8 sps:$4 sm:$0xff]  }
   0xb   :  { %658 = vmatpush3.bf16.msra.mxu0 %v786_v5  ;;  %775 = vmatpush3.bf16.msra.mxu1 %v786_v5  ;;  %v819_v30 = vld [vmem:[%s1103_s0 + $0x30] ss:$8 sps:$4 sm:$0xff]   ;;  %v821_v32 = vld [vmem:[%s1103_s0 + $0x44] ss:$8 sps:$4 sm:$0xff]   ;;  %v825_v34 = vld [vmem:[%s1103_s0 + $0x40] ss:$8 sps:$4 sm:$0xff]  }
   0xc   :  { %659 = vmatprep.subr.bf16.mxu0 %v787_v6  ;;  %768 = vmatprep.subr.bf16.mxu1 %v787_v6  ;;  %v820_v31 = vld [vmem:[%s1103_s0 + $0xb0] ss:$8 sps:$4 sm:$0xff]   ;;  %v823_v33 = vld [vmem:[%s1103_s0 + $0xc4] ss:$8 sps:$4 sm:$0xff]   ;;  %v826_v35 = vld [vmem:[%s1103_s0 + $0xc0] ss:$8 sps:$4 sm:$0xff]  }
   0xd   :  { %v827_v36 = vld [vmem:[%s1103_s0 + $0x54] ss:$8 sps:$4 sm:$0xff]   ;;  %v831_v38 = vld [vmem:[%s1103_s0 + $0x50] ss:$8 sps:$4 sm:$0xff]   ;;  %v833_v40 = vld [vmem:[%s1103_s0 + $0x64] ss:$8 sps:$4 sm:$0xff]  }
   0xe   :  { %v829_v37 = vld [vmem:[%s1103_s0 + $0xd4] ss:$8 sps:$4 sm:$0xff]   ;;  %v832_v39 = vld [vmem:[%s1103_s0 + $0xd0] ss:$8 sps:$4 sm:$0xff]   ;;  %v835_v41 = vld [vmem:[%s1103_s0 + $0xe4] ss:$8 sps:$4 sm:$0xff]  }
   0xf   :  { %660 = vmatpush3.bf16.msra.mxu0 %v788_v7  ;;  %776 = vmatpush3.bf16.msra.mxu1 %v788_v7  ;;  %v837_v42 = vld [vmem:[%s1103_s0 + $0x60] ss:$8 sps:$4 sm:$0xff]   ;;  %v839_v44 = vld [vmem:[%s1103_s0 + $0x74] ss:$8 sps:$4 sm:$0xff]   ;;  %v843_v46 = vld [vmem:[%s1103_s0 + $0x70] ss:$8 sps:$4 sm:$0xff]  }
  0x10   :  { %661 = vmatprep.subr.bf16.mxu0 %v789_v8  ;;  %769 = vmatprep.subr.bf16.mxu1 %v789_v8  ;;  %v838_v43 = vld [vmem:[%s1103_s0 + $0xe0] ss:$8 sps:$4 sm:$0xff]   ;;  %v841_v45 = vld [vmem:[%s1103_s0 + $0xf4] ss:$8 sps:$4 sm:$0xff]   ;;  %v844_v47 = vld [vmem:[%s1103_s0 + $0xf0] ss:$8 sps:$4 sm:$0xff]  }
  0x13   :  { %662 = vmatpush3.bf16.msra.mxu0 %v790_v9  ;;  %777 = vmatpush3.bf16.msra.mxu1 %v790_v9 }
  0x14   :  { %663 = vmatprep.subr.bf16.mxu0 %v791_v10  ;;  %770 = vmatprep.subr.bf16.mxu1 %v791_v10 }
  0x17   :  { %664 = vmatpush3.bf16.msra.mxu0 %v792_v13  ;;  %778 = vmatpush3.bf16.msra.mxu1 %v792_v13 }
  0x18   :  { %665 = vmatprep.subr.bf16.mxu0 %v793_v14  ;;  %771 = vmatprep.subr.bf16.mxu1 %v793_v14 }
  0x1b   :  { %666 = vmatpush3.bf16.msra.mxu0 %v794_v15  ;;  %779 = vmatpush3.bf16.msra.mxu1 %v794_v15 }
  0x1c   :  { %667 = vmatprep.subr.bf16.mxu0 %v795_v16  ;;  %772 = vmatprep.subr.bf16.mxu1 %v795_v16 }
  0x1f   :  { %668 = vmatpush3.bf16.msra.mxu0 %v796_v17  ;;  %780 = vmatpush3.bf16.msra.mxu1 %v796_v17 }
  0x22   :  { %368 = vmatmul.mubr.bf16.vlgmr.msra.gmra.mxu0 %v797_v18  ;;  %432 = vmatmul.mubr.bf16.vlgmr.msra.gmra.mxu1 %v800_v19 }
  0x23   :  { %375 = vmatprep.mubr.bf16.mxu0 %v803_v20  ;;  %439 = vmatprep.mubr.bf16.mxu1 %v805_v21 }
  0x2a   :  { %376 = vmatmul.mubr.bf16.gmra.mxu0 %v807_v22  ;;  %440 = vmatmul.mubr.bf16.gmra.mxu1 %v808_v23 }
  0x2b   :  { %383 = vmatprep.mubr.bf16.mxu0 %v809_v24  ;;  %447 = vmatprep.mubr.bf16.mxu1 %v811_v25 }
  0x32   :  { %384 = vmatmul.mubr.bf16.gmra.mxu0 %v813_v26  ;;  %448 = vmatmul.mubr.bf16.gmra.mxu1 %v814_v27 }
  0x33   :  { %391 = vmatprep.mubr.bf16.mxu0 %v815_v28  ;;  %455 = vmatprep.mubr.bf16.mxu1 %v817_v29  ;;  %v1044_v29 = vld [vmem:[%s1104_s2] ss:$0 sm:$0xff] }
  0x3a   :  { %392 = vmatmul.mubr.bf16.gmra.mxu0 %v819_v30  ;;  %456 = vmatmul.mubr.bf16.gmra.mxu1 %v820_v31 }
  0x3b   :  { %399 = vmatprep.mubr.bf16.mxu0 %v821_v32  ;;  %463 = vmatprep.mubr.bf16.mxu1 %v823_v33 }
  0x42   :  { %400 = vmatmul.mubr.bf16.gmra.mxu0 %v825_v34  ;;  %464 = vmatmul.mubr.bf16.gmra.mxu1 %v826_v35 }
  0x43   :  { %407 = vmatprep.mubr.bf16.mxu0 %v827_v36  ;;  %471 = vmatprep.mubr.bf16.mxu1 %v829_v37 }
  0x4a   :  { %408 = vmatmul.mubr.bf16.gmra.mxu0 %v831_v38  ;;  %472 = vmatmul.mubr.bf16.gmra.mxu1 %v832_v39 }
  0x4b   :  { %415 = vmatprep.mubr.bf16.mxu0 %v833_v40  ;;  %479 = vmatprep.mubr.bf16.mxu1 %v835_v41 }
  0x52   :  { %416 = vmatmul.mubr.bf16.gmra.mxu0 %v837_v42  ;;  %480 = vmatmul.mubr.bf16.gmra.mxu1 %v838_v43 }
  0x53   :  { %423 = vmatprep.mubr.bf16.mxu0 %v839_v44  ;;  %487 = vmatprep.mubr.bf16.mxu1 %v841_v45 }
  0x5a   :  { %424 = vmatmul.mubr.bf16.gmra.mxu0 %v843_v46  ;;  %488 = vmatmul.mubr.bf16.gmra.mxu1 %v844_v47 }
  0xe2   :  { %v669_v48 = vpop.f32.mrf.mxu0  ;;  %v717_v49 = vpop.f32.mrf.mxu1 }
  0xe4   :  { %v670_v50 = vpop.f32.mrf.mxu0  ;;  %v718_v51 = vpop.f32.mrf.mxu1 }
  0xe5   :  { %v671_v20 = vadd.f32 %v670_v50, %v669_v48  ;;  %v719_v21 = vadd.f32 %v718_v51, %v717_v49 }
  0xe6   :  { %v672_v52 = vpop.f32.mrf.mxu0  ;;  %v720_v53 = vpop.f32.mrf.mxu1 }
  0xe8   :  { %v673_v54 = vpop.f32.mrf.mxu0  ;;  %v721_v55 = vpop.f32.mrf.mxu1 }
  0xe9   :  { %v674_v28 = vadd.f32 %v673_v54, %v672_v52  ;;  %v722_v32 = vadd.f32 %v721_v55, %v720_v53 }
  0xea   :  { %v675_v56 = vpop.f32.mrf.mxu0  ;;  %v723_v57 = vpop.f32.mrf.mxu1 }
  0xec   :  { %v676_v58 = vpop.f32.mrf.mxu0  ;;  %v724_v59 = vpop.f32.mrf.mxu1 }
  0xed   :  { %v677_v41 = vadd.f32 %v676_v58, %v675_v56  ;;  %v725_v42 = vadd.f32 %v724_v59, %v723_v57 }
  0xee   :  { %v678_v60 = vpop.f32.mrf.mxu0  ;;  %v726_v61 = vpop.f32.mrf.mxu1 }
  0xf0   :  { %v679_v62 = vpop.f32.mrf.mxu0  ;;  %v727_v63 = vpop.f32.mrf.mxu1 }
  0xf1   :  { %v680_v55 = vadd.f32 %v679_v62, %v678_v60 }
  0xf2   :  { %v1009_v0 = vpop.f32.mrf.mxu0  ;;  %v1011_v1 = vpop.f32.mrf.mxu1 }
  0xf4   :  { %v1013_v2 = vpop.f32.mrf.mxu0  ;;  %v1015_v3 = vpop.f32.mrf.mxu1 }
  0xf5   :  { %v683_v60 = vadd.f32 %v1013_v2, %v1009_v0 }
  0xf6   :  { %v1017_v4 = vpop.f32.mrf.mxu0  ;;  %v1019_v5 = vpop.f32.mrf.mxu1 }
  0xf8   :  { %v1021_v6 = vpop.f32.mrf.mxu0  ;;  %v1023_v7 = vpop.f32.mrf.mxu1 }
  0xfa   :  { %v1025_v8 = vpop.f32.mrf.mxu0  ;;  %v1027_v9 = vpop.f32.mrf.mxu1 }
  0xfc   :  { %v1029_v10 = vpop.f32.mrf.mxu0  ;;  %v1031_v11 = vpop.f32.mrf.mxu1 }
  0xfe   :  { %v1033_v12 = vpop.f32.mrf.mxu0  ;;  %v1035_v13 = vpop.f32.mrf.mxu1 }
 0x100   :  { %v1037_v14 = vpop.f32.mrf.mxu0  ;;  %v1039_v15 = vpop.f32.mrf.mxu1 }
 0x102   :  { %v693_v16 = vpop.f32.mrf.mxu0  ;;  %v741_v17 = vpop.f32.mrf.mxu1 }
 0x104   :  { %v694_v18 = vpop.f32.mrf.mxu0  ;;  %v742_v19 = vpop.f32.mrf.mxu1 }
 0x105   :  { %v695_v22 = vadd.f32 %v694_v18, %v693_v16  ;;  %v743_v23 = vadd.f32 %v742_v19, %v741_v17  ;;  %v728_v16 = vadd.f32 %v727_v63, %v726_v61  ;;  %v731_v61 = vadd.f32 %v1015_v3, %v1011_v1 }
 0x106   :  { %v696_v24 = vpop.f32.mrf.mxu0  ;;  %v744_v25 = vpop.f32.mrf.mxu1  ;;  %v686_v1 = vadd.f32 %v1021_v6, %v1017_v4  ;;  %v734_v3 = vadd.f32 %v1023_v7, %v1019_v5  ;;  %v689_v5 = vadd.f32 %v1029_v10, %v1025_v8  ;;  %v737_v7 = vadd.f32 %v1031_v11, %v1027_v9 }
 0x107   :  { %v496_v26 = vmax.f32 %v671_v20, %v695_v22  ;;  %v504_v27 = vmax.f32 %v719_v21, %v743_v23  ;;  %v692_v9 = vadd.f32 %v1037_v14, %v1033_v12  ;;  %v740_v11 = vadd.f32 %v1039_v15, %v1035_v13 }
 0x108   :  { %v697_v30 = vpop.f32.mrf.mxu0  ;;  %v745_v31 = vpop.f32.mrf.mxu1 }
 0x109   :  { %v512_v33 = vmax.f32 %v496_v26, %v504_v27  ;;  %v698_v34 = vadd.f32 %v697_v30, %v696_v24  ;;  %v746_v35 = vadd.f32 %v745_v31, %v744_v25 }
 0x10a   :  { %v699_v36 = vpop.f32.mrf.mxu0  ;;  %v747_v37 = vpop.f32.mrf.mxu1 }
 0x10b   :  { %v527_v38 = vadd.f32 %v1044_v29, %v512_v33  ;;  %v497_v39 = vmax.f32 %v674_v28, %v698_v34  ;;  %v505_v40 = vmax.f32 %v722_v32, %v746_v35 }
 0x10c   :  { %v700_v43 = vpop.f32.mrf.mxu0  ;;  %v748_v44 = vpop.f32.mrf.mxu1 }
 0x10d   :  { %v535_v45 = vmax.f32 %v527_v38, 0.0  ;;  %v513_v46 = vmax.f32 %v497_v39, %v505_v40  ;;  %v701_v47 = vadd.f32 %v700_v43, %v699_v36  ;;  %v749_v48 = vadd.f32 %v748_v44, %v747_v37 }
 0x10e   :  { %v702_v49 = vpop.f32.mrf.mxu0  ;;  %v750_v50 = vpop.f32.mrf.mxu1 }
 0x10f   :  { %v645_v51 = vpack.c.bf16 %v535_v45, %v535_v45  ;;  %v528_v52 = vadd.f32 %v1044_v29, %v513_v46  ;;  %v498_v53 = vmax.f32 %v677_v41, %v701_v47  ;;  %v506_v54 = vmax.f32 %v725_v42, %v749_v48 }
 0x110   :  { %v703_v17 = vpop.f32.mrf.mxu0  ;;  %v751_v18 = vpop.f32.mrf.mxu1 }
 0x111   :  { %576 = vst.msk [vmem:[%s1105_s3] sm:$0xf] %vm575_vm0, %v645_v51  ;;  %v536_v56 = vmax.f32 %v528_v52, 0.0  ;;  %v514_v57 = vmax.f32 %v498_v53, %v506_v54  ;;  %v704_v58 = vadd.f32 %v703_v17, %v702_v49  ;;  %v752_v59 = vadd.f32 %v751_v18, %v750_v50 }
 0x112   :  { %v705_v19 = vpop.f32.mrf.mxu0  ;;  %v753_v20 = vpop.f32.mrf.mxu1 }
 0x113   :  { %v646_v21 = vpack.c.bf16 %v536_v56, %v536_v56  ;;  %v529_v22 = vadd.f32 %v1044_v29, %v514_v57  ;;  %v499_v23 = vmax.f32 %v680_v55, %v704_v58  ;;  %v507_v24 = vmax.f32 %v728_v16, %v752_v59 }
 0x114   :  { %v706_v62 = vpop.f32.mrf.mxu0  ;;  %v754_v63 = vpop.f32.mrf.mxu1 }
 0x115   :  { %577 = vst.msk [vmem:[%s1105_s3 + $0x4] sm:$0xf] %vm575_vm0, %v646_v21  ;;  %v537_v25 = vmax.f32 %v529_v22, 0.0  ;;  %v515_v26 = vmax.f32 %v499_v23, %v507_v24  ;;  %v707_v27 = vadd.f32 %v706_v62, %v705_v19  ;;  %v755_v28 = vadd.f32 %v754_v63, %v753_v20 }
 0x116   :  { %v708_v30 = vpop.f32.mrf.mxu0  ;;  %v756_v31 = vpop.f32.mrf.mxu1 }
 0x117   :  { %v647_v32 = vpack.c.bf16 %v537_v25, %v537_v25  ;;  %v530_v33 = vadd.f32 %v1044_v29, %v515_v26  ;;  %v500_v0 = vmax.f32 %v683_v60, %v707_v27  ;;  %v508_v2 = vmax.f32 %v731_v61, %v755_v28 }
 0x118   :  { %v709_v34 = vpop.f32.mrf.mxu0  ;;  %v757_v35 = vpop.f32.mrf.mxu1 }
 0x119   :  { %578 = vst.msk [vmem:[%s1105_s3 + $0x8] sm:$0xf] %vm575_vm0, %v647_v32  ;;  %v538_v36 = vmax.f32 %v530_v33, 0.0  ;;  %v516_v37 = vmax.f32 %v500_v0, %v508_v2  ;;  %v710_v38 = vadd.f32 %v709_v34, %v708_v30  ;;  %v758_v39 = vadd.f32 %v757_v35, %v756_v31 }
 0x11a   :  { %v711_v40 = vpop.f32.mrf.mxu0  ;;  %v759_v41 = vpop.f32.mrf.mxu1 }
 0x11b   :  { %v648_v42 = vpack.c.bf16 %v538_v36, %v538_v36  ;;  %v531_v43 = vadd.f32 %v1044_v29, %v516_v37  ;;  %v501_v4 = vmax.f32 %v686_v1, %v710_v38  ;;  %v509_v6 = vmax.f32 %v734_v3, %v758_v39 }
 0x11c   :  { %v712_v44 = vpop.f32.mrf.mxu0  ;;  %v760_v45 = vpop.f32.mrf.mxu1 }
 0x11d   :  { %579 = vst.msk [vmem:[%s1105_s3 + $0xc] sm:$0xf] %vm575_vm0, %v648_v42  ;;  %v539_v46 = vmax.f32 %v531_v43, 0.0  ;;  %v517_v47 = vmax.f32 %v501_v4, %v509_v6  ;;  %v713_v48 = vadd.f32 %v712_v44, %v711_v40  ;;  %v761_v49 = vadd.f32 %v760_v45, %v759_v41 }
 0x11e   :  { %v714_v50 = vpop.f32.mrf.mxu0  ;;  %v762_v51 = vpop.f32.mrf.mxu1 }
 0x11f   :  { %v649_v52 = vpack.c.bf16 %v539_v46, %v539_v46  ;;  %v532_v53 = vadd.f32 %v1044_v29, %v517_v47  ;;  %v502_v8 = vmax.f32 %v689_v5, %v713_v48  ;;  %v510_v10 = vmax.f32 %v737_v7, %v761_v49 }
 0x120   :  { %v715_v54 = vpop.f32.mrf.mxu0  ;;  %v763_v55 = vpop.f32.mrf.mxu1 }
 0x121   :  { %580 = vst.msk [vmem:[%s1105_s3 + $0x10] sm:$0xf] %vm575_vm0, %v649_v52  ;;  %v540_v16 = vmax.f32 %v532_v53, 0.0  ;;  %v518_v17 = vmax.f32 %v502_v8, %v510_v10  ;;  %v716_v18 = vadd.f32 %v715_v54, %v714_v50  ;;  %v764_v56 = vadd.f32 %v763_v55, %v762_v51 }
 0x123   :  { %v650_v57 = vpack.c.bf16 %v540_v16, %v540_v16  ;;  %v533_v58 = vadd.f32 %v1044_v29, %v518_v17  ;;  %v503_v59 = vmax.f32 %v692_v9, %v716_v18  ;;  %v511_v19 = vmax.f32 %v740_v11, %v764_v56 }
 0x125   :  { %581 = vst.msk [vmem:[%s1105_s3 + $0x14] sm:$0xf] %vm575_vm0, %v650_v57  ;;  %v541_v12 = vmax.f32 %v533_v58, 0.0  ;;  %v519_v13 = vmax.f32 %v503_v59, %v511_v19 }
 0x127   :  { %v651_v14 = vpack.c.bf16 %v541_v12, %v541_v12  ;;  %v534_v15 = vadd.f32 %v1044_v29, %v519_v13 }
 0x129   :  { %582 = vst.msk [vmem:[%s1105_s3 + $0x18] sm:$0xf] %vm575_vm0, %v651_v14  ;;  %v542_v20 = vmax.f32 %v534_v15, 0.0 }
 0x12b   :  { %v652_v21 = vpack.c.bf16 %v542_v20, %v542_v20 }
 0x12d   :  { %583 = vst.msk [vmem:[%s1105_s3 + $0x1c] sm:$0xf] %vm575_vm0, %v652_v21 }

// kernel: cnn_forward.5
= control target key start
LH: loop header
LB: loop body
LE: loop exit
PB: predicated region body
PF: predicated region fallthrough
CT: control target
= control target key end

     0   :  { %v800_v1 = vmov 0   ;;  %v98_v20 = vlaneseq  ;;  %v801_v25 = vmov 1966171168   ;;  %vm264_vm0 = vcmask 130048   ;;  %s1013_s0 = inlined_call_operand.vmem [shape: bf16[2,400], index: 0, kind: input, shape index: {}]   ;;  %s1014_s1 = inlined_call_operand.vmem [shape: bf16[400,128], index: 1, kind: input, shape index: {}]   ;;  %s1015_s2 = inlined_call_operand.vmem [shape: f32[1,128], index: 2, kind: input, shape index: {}]   ;;  %s1016_s3 = inlined_call_operand.vmem [shape: bf16[128,128], index: 3, kind: input, shape index: {}]   ;;  %s1017_s4 = inlined_call_operand.vmem [shape: f32[1,128], index: 4, kind: input, shape index: {}]   ;;  %s1018_s5 = inlined_call_operand.vmem [shape: bf16[128,10], index: 5, kind: input, shape index: {}]   ;;  %s1019_s6 = inlined_call_operand.vmem [shape: f32[1,10], index: 6, kind: input, shape index: {}]   ;;  %s1020_s7 = inlined_call_operand.hbm [shape: f32[2,10], index: 7, kind: output, shape index: {}]  }
   0x1   :  { %v733_v0 = vld [vmem:[%s1014_s1 + $0x78] sm:$0xff]   ;;  %308 = vmatprep.subr.bf16.mxu1 %v800_v1  ;;  %v736_v4 = vld [vmem:[%s1014_s1 + $0x70] sm:$0xff]   ;;  %v739_v7 = vld [vmem:[%s1014_s1 + $0x68] sm:$0xff]   ;;  %v96_v26 = vunpack.c.l.s4 %v801_v25  ;;  %v802_v38 = vmov 0.0  }
   0x2   :  { %v734_v2 = vld [vmem:[%s1014_s1 + $0xb8] sm:$0xff]   ;;  %648 = vmatprep.subr.bf16.mxu0 %v733_v0  ;;  %v737_v5 = vld [vmem:[%s1014_s1 + $0xb0] sm:$0xff]   ;;  %v740_v8 = vld [vmem:[%s1014_s1 + $0xa8] sm:$0xff]   ;;  %v99_v27 = vshrl.u32 %v98_v20, 7 }
   0x3   :  { %v735_v3 = vld [vmem:[%s1014_s1 + $0x38] sm:$0xff]   ;;  %309 = vmatpush1.bf16.msra.mxu1 %v734_v2  ;;  %v738_v6 = vld [vmem:[%s1014_s1 + $0x30] sm:$0xff]   ;;  %v741_v9 = vld [vmem:[%s1014_s1 + $0x28] sm:$0xff]   ;;  %v97_v30 = vunpack.c.0.s8 %v96_v26 }
   0x4   :  { %649 = vmatpush3.bf16.msra.mxu0 %v735_v3  ;;  %310 = vmatprep.subr.bf16.mxu1 %v800_v1  ;;  %v742_v10 = vld [vmem:[%s1014_s1 + $0x60] sm:$0xff]   ;;  %v745_v13 = vld [vmem:[%s1014_s1 + $0x58] sm:$0xff]   ;;  %v748_v16 = vld [vmem:[%s1014_s1 + $0x50] sm:$0xff]  }
   0x5   :  { %650 = vmatprep.subr.bf16.mxu0 %v736_v4  ;;  %v743_v11 = vld [vmem:[%s1014_s1 + $0xa0] sm:$0xff]   ;;  %v746_v14 = vld [vmem:[%s1014_s1 + $0x98] sm:$0xff]   ;;  %v749_v17 = vld [vmem:[%s1014_s1 + $0x90] sm:$0xff]   ;;  %v100_v32 = vsub.s32 %v97_v30, %v99_v27 }
   0x6   :  { %v744_v12 = vld [vmem:[%s1014_s1 + $0x20] sm:$0xff]   ;;  %v747_v15 = vld [vmem:[%s1014_s1 + $0x18] sm:$0xff]   ;;  %v750_v18 = vld [vmem:[%s1014_s1 + $0x10] sm:$0xff]  }
   0x7   :  { %311 = vmatpush1.bf16.msra.mxu1 %v737_v5  ;;  %v751_v19 = vld [vmem:[%s1014_s1 + $0x48] sm:$0xff]   ;;  %v603_v23 = vld.sshfl [vmem:[%s1013_s0] sm:$0x33 pattern:$0x75316420]  ;;  %v758_v34 = vld [vmem:[%s1016_s3 + $0x38] sm:$0xff]  }
   0x8   :  { %651 = vmatpush3.bf16.msra.mxu0 %v738_v6  ;;  %312 = vmatprep.subr.bf16.mxu1 %v800_v1  ;;  %v752_v21 = vld [vmem:[%s1014_s1 + $0x88] sm:$0xff]   ;;  %v754_v24 = vld [vmem:[%s1014_s1 + $0x40] sm:$0xff]   ;;  %v94_v29 = vcombine.high %v603_v23, %v603_v23  ;;  %v101_v36 = vrot.slane %v603_v23, %v100_v32  ;;  %v759_v40 = vld [vmem:[%s1016_s3 + $0x30] sm:$0xff]  }
   0x9   :  { %652 = vmatprep.subr.bf16.mxu0 %v739_v7  ;;  %v753_v22 = vld [vmem:[%s1014_s1 + $0x8] sm:$0xff]   ;;  %v755_v28 = vld [vmem:[%s1014_s1 + $0x80] sm:$0xff]  }
   0xa   :  { %v756_v31 = vld [vmem:[%s1014_s1] sm:$0xff]   ;;  %v108_v35 = vrot.slane %v94_v29, %v100_v32  ;;  %v109_v39 = vcombine.high %v101_v36, %v101_v36 }
   0xb   :  { %313 = vmatpush1.bf16.msra.mxu1 %v740_v8  ;;  %v757_v33 = vld [vmem:[%s1014_s1 + $0xc0] sm:$0xff]  }
   0xc   :  { %653 = vmatpush3.bf16.msra.mxu0 %v741_v9  ;;  %314 = vmatprep.subr.bf16.mxu1 %v800_v1  ;;  %v110_v37 = vcombine.high %v108_v35, %v108_v35 }
   0xd   :  { %654 = vmatprep.subr.bf16.mxu0 %v742_v10  ;;  %300 = vmatprep.mubr.bf16.mxu0 %v108_v35 }
   0xe   :  { %629 = vmatprep.mubr.msk.bf16.mxu1 %vm264_vm0, %v110_v37 }
   0xf   :  { %315 = vmatpush1.bf16.msra.mxu1 %v743_v11 }
  0x10   :  { %655 = vmatpush3.bf16.msra.mxu0 %v744_v12  ;;  %316 = vmatprep.subr.bf16.mxu1 %v800_v1 }
  0x11   :  { %656 = vmatprep.subr.bf16.mxu0 %v745_v13 }
  0x13   :  { %317 = vmatpush1.bf16.msra.mxu1 %v746_v14 }
  0x14   :  { %657 = vmatpush3.bf16.msra.mxu0 %v747_v15  ;;  %318 = vmatprep.subr.bf16.mxu1 %v800_v1 }
  0x15   :  { %658 = vmatprep.subr.bf16.mxu0 %v748_v16 }
  0x17   :  { %319 = vmatpush1.bf16.msra.mxu1 %v749_v17 }
  0x18   :  { %659 = vmatpush3.bf16.msra.mxu0 %v750_v18  ;;  %320 = vmatprep.subr.bf16.mxu1 %v800_v1 }
  0x19   :  { %660 = vmatprep.subr.bf16.mxu0 %v751_v19 }
  0x1b   :  { %321 = vmatpush1.bf16.msra.mxu1 %v752_v21 }
  0x1c   :  { %661 = vmatpush3.bf16.msra.mxu0 %v753_v22  ;;  %322 = vmatprep.subr.bf16.mxu1 %v800_v1 }
  0x1d   :  { %662 = vmatprep.subr.bf16.mxu0 %v754_v24 }
  0x1f   :  { %323 = vmatpush1.bf16.msra.mxu1 %v755_v28 }
  0x20   :  { %663 = vmatpush3.bf16.msra.mxu0 %v756_v31  ;;  %338 = vmatprep.subr.bf16.mxu1 %v800_v1 }
  0x21   :  { %688 = vmatprep.subr.bf16.mxu0 %v802_v38 }
  0x23   :  { %301 = vmatmul.mubr.bf16.vlgmr.msra.gmra.mxu0 %v101_v36  ;;  %339 = vmatpush2.bf16.msra.mxu1 %v757_v33 }
  0x24   :  { %689 = vmatpush3.bf16.msra.mxu0 %v758_v34  ;;  %708 = vmatprep.subr.bf16.mxu1 %v802_v38 }
  0x25   :  { %690 = vmatprep.subr.bf16.mxu0 %v802_v38 }
  0x26   :  { %341 = vmatmul.mubr.bf16.vlgmr.msra.gmra.mxu1 %v109_v39 }
  0x27   :  { %12 = vsyncpa [#allocation3], 0  ;;  %v760_v41 = vld [vmem:[%s1016_s3 + $0x28] sm:$0xff]   ;;  %v761_v42 = vld [vmem:[%s1016_s3 + $0x20] sm:$0xff]   ;;  %vm803_vm1 = vmmov 0   ;;  %vm574_vm2 = vcmask 74752  }
  0x28   :  { %691 = vmatpush3.bf16.msra.mxu0 %v759_v40  ;;  %v762_v43 = vld [vmem:[%s1016_s3 + $0x18] sm:$0xff]   ;;  %v763_v44 = vld [vmem:[%s1016_s3 + $0x10] sm:$0xff]   ;;  %v764_v45 = vld [vmem:[%s1016_s3 + $0x8] sm:$0xff]   ;;  %704 = vmatprep.mubr.msk.bf16.mxu0 %vm803_vm1, %v802_v38 }
  0x29   :  { %692 = vmatprep.subr.bf16.mxu0 %v802_v38  ;;  %v765_v46 = vld [vmem:[%s1016_s3] sm:$0xff]   ;;  %724 = vmatprep.mubr.msk.bf16.mxu1 %vm803_vm1, %v802_v38  ;;  %v766_v47 = vld [vmem:[%s1018_s5 + $0x38] sm:$0xff]   ;;  %v767_v48 = vld [vmem:[%s1018_s5 + $0x30] sm:$0xff]  }
  0x2a   :  { %709 = vmatpush3.bf16.msra.mxu1 %v766_v47  ;;  %v768_v49 = vld [vmem:[%s1018_s5 + $0x28] sm:$0xff]   ;;  %v769_v50 = vld [vmem:[%s1018_s5 + $0x20] sm:$0xff]   ;;  %v770_v51 = vld [vmem:[%s1018_s5 + $0x18] sm:$0xff]  }
  0x2b   :  { %710 = vmatprep.subr.bf16.mxu1 %v802_v38  ;;  %v771_v52 = vld [vmem:[%s1018_s5 + $0x10] sm:$0xff]   ;;  %v602_v55 = vld [vmem:[%s1015_s2] ss:$0 sm:$0xff]  ;;  %v772_v3 = vld [vmem:[%s1018_s5 + $0x8] sm:$0xff]  }
  0x2c   :  { %693 = vmatpush3.bf16.msra.mxu0 %v760_v41  ;;  %v773_v4 = vld [vmem:[%s1018_s5] sm:$0xff]  }
  0x2d   :  { %694 = vmatprep.subr.bf16.mxu0 %v802_v38  ;;  %v630_v5 = vld [vmem:[%s1017_s4] ss:$0 sm:$0xff]  ;;  %s804_s4 = smov [#allocation2]  }
  0x2e   :  { %711 = vmatpush3.bf16.msra.mxu1 %v767_v48  ;;  %v639_v13 = vld [vmem:[%s1019_s6] ss:$0 sm:$0xff]  ;;  %s594_s5 = sshll.u32 %s804_s4, 4  ;;  %s595_s5 = int_to_ptr.vmem [resolvable:$true] %s594_s5 }
  0x2f   :  { %712 = vmatprep.subr.bf16.mxu1 %v802_v38  ;;  %s778_s6 = scalar_lea.vmem %s595_s5, 32  ;;  %p783_p1 = scmp.lt.s32.totalorder %s595_s5, %s595_s5 }
  0x30   :  { %695 = vmatpush3.bf16.msra.mxu0 %v761_v42  ;;  %p779_p0 = scmp.ne.s32.totalorder %s595_s5, %s778_s6  ;;  %p784_p2 = scmp.lt.s32.totalorder %s778_s6, %s778_s6 }
  0x31   :  { %696 = vmatprep.subr.bf16.mxu0 %v802_v38 }
  0x32   :  { %713 = vmatpush3.bf16.msra.mxu1 %v768_v49  ;;  %p785_p3 = por %p784_p2, %p783_p1 }
  0x33   :  { %714 = vmatprep.subr.bf16.mxu1 %v802_v38 }
  0x34   :  { %697 = vmatpush3.bf16.msra.mxu0 %v762_v43  ;;  %p786_p4 = pnand %p785_p3, %p779_p0 }
  0x35   :  { %698 = vmatprep.subr.bf16.mxu0 %v802_v38 }
  0x36   :  { %715 = vmatpush3.bf16.msra.mxu1 %v769_v50 }
  0x37   :  { %716 = vmatprep.subr.bf16.mxu1 %v802_v38 }
  0x38   :  { %699 = vmatpush3.bf16.msra.mxu0 %v763_v44 }
  0x39   :  { %700 = vmatprep.subr.bf16.mxu0 %v802_v38 }
  0x3a   :  { %717 = vmatpush3.bf16.msra.mxu1 %v770_v51 }
  0x3b   :  { %718 = vmatprep.subr.bf16.mxu1 %v802_v38 }
  0x3c   :  { %701 = vmatpush3.bf16.msra.mxu0 %v764_v45 }
  0x3d   :  { %702 = vmatprep.subr.bf16.mxu0 %v802_v38 }
  0x3e   :  { %719 = vmatpush3.bf16.msra.mxu1 %v771_v52 }
  0x3f   :  { %720 = vmatprep.subr.bf16.mxu1 %v802_v38 }
  0x40   :  { %703 = vmatpush3.bf16.msra.mxu0 %v765_v46 }
  0x42   :  { %721 = vmatpush3.bf16.msra.mxu1 %v772_v3 }
  0x43   :  { %722 = vmatprep.subr.bf16.mxu1 %v802_v38 }
  0x46   :  { %723 = vmatpush3.bf16.msra.mxu1 %v773_v4 }
  0xe3   :  { %v664_v53 = vpop.f32.mrf.mxu0 }
  0xe5   :  { %v665_v54 = vpop.f32.mrf.mxu0 }
  0xe6   :  { %v666_v56 = vadd.f32 %v665_v54, %v664_v53  ;;  %v342_v57 = vpop.f32.mrf.mxu1 }
  0xe7   :  { %v667_v58 = vpop.f32.mrf.mxu0 }
  0xe8   :  { %v303_v59 = vadd.f32 %v666_v56, %v602_v55  ;;  %v344_v60 = vpop.f32.mrf.mxu1 }
  0xe9   :  { %v668_v61 = vpop.f32.mrf.mxu0 }
  0xea   :  { %v343_v62 = vadd.f32 %v342_v57, %v303_v59  ;;  %v345_v63 = vpop.f32.mrf.mxu1 }
  0xec   :  { %v348_v0 = vmax.f32 %v343_v62, 0.0  ;;  %v346_v1 = vpop.f32.mrf.mxu1 }
  0xee   :  { %v349_v2 = vpack.c.bf16 %v348_v0, %v348_v0 }
  0xf0   :  { %705 = vmatmul.mubr.bf16.vlgmr.msra.gmra.mxu0 %v349_v2 }
 0x1b0   :  { %v455_v6 = vpop.f32.mrf.mxu0 }
 0x1b1   :  { %v456_v7 = vadd.f32 %v630_v5, %v455_v6 }
 0x1b2   :  { %v706_v8 = vpop.f32.mrf.mxu0 }
 0x1b3   :  { %v461_v9 = vmax.f32 %v456_v7, 0.0 }
 0x1b4   :  { %v458_v10 = vpop.f32.mrf.mxu0 }
 0x1b5   :  { %v462_v11 = vpack.c.bf16 %v461_v9, %v461_v9 }
 0x1b6   :  { %v707_v12 = vpop.f32.mrf.mxu0 }
 0x1b7   :  { %725 = vmatmul.mubr.bf16.vlgmr.msra.gmra.mxu1 %v462_v11 }
 0x277   :  { %v568_v14 = vpop.f32.mrf.mxu1 }
 0x278   :  { %v569_v15 = vadd.f32 %v639_v13, %v568_v14 }
 0x279   :  { %v726_v16 = vpop.f32.mrf.mxu1 }
 0x27a   :  { %v575_v17 = vsel %vm574_vm2, %v569_v15, -inf }
 0x27b   :  { %576 = vmax.xlane.f32.xlu0 %v575_v17  ;;  %v571_v18 = vpop.f32.mrf.mxu1 }
 0x27d   :  { %v727_v19 = vpop.f32.mrf.mxu1 }
 0x304   :  { %v577_v20 = vpop.xlane.xlu0 %576 }
 0x305   :  { %v578_v21 = vsub.f32 %v569_v15, %v577_v20 }
 0x307   :  { %v579_v22 = vmul.f32 1.442695, %v578_v21 }
 0x309   :  { %774 = vpow2.f32 %v579_v22 }
 0x316   :  { %v775_v23 = vpop.eup %774 }
 0x317   :  { %v581_v24 = vsel %vm574_vm2, %v775_v23, 0.0 }
 0x318   :  { %582 = vadd.xlane.f32.xlu0 %v581_v24 }
 0x3a1   :  { %v583_v25 = vpop.xlane.xlu0 %582 }
 0x3a2   :  { %776 = vlog2.f32 %v583_v25 }
 0x3af   :  { %v777_v26 = vpop.eup %776 }
 0x3b0   :  { %v585_v27 = vmul.f32 0.6931472, %v777_v26 }
 0x3b2   :  { %v586_v28 = vsub.f32 %v578_v21, %v585_v27 }
 0x3b4   :  { %587 = vst.msk [vmem:[#allocation2] sm:$0x3] %vm574_vm2, %v586_v28 }
 0x3b5   :  { %789 = shalt.err (!%p786_p4)
}
 0x3b6   :  { %597 = dma.vmem_to_hbm [thread:$0]  %s595_s5, 32, %s1020_s7, [#allocation3]  }
 0x3b7   :  { %798 = dma.done.wait [#allocation3], 32  }
 0x3b8   :  { %799 = vsyncadd [#allocation3], 4294967264 }
 0x3b9   :  { %601 = vsyncpa [#allocation3], 1 }

</bundles_post_ra>
